<compile_context>
chip_gen: v5e
topology: v5e:2x2
jax: 0.10.0
libtpu: 0.0.40
codegen_flags: <defaults>
</compile_context>

<pallas_src>
import functools

import jax
import jax.numpy as jnp
from jax.experimental import pallas as pl
from jax.experimental.pallas import tpu as pltpu

PAD = 128  # lane-dense width for the narrow (32 / action_dim) layers


def _policy_mlp_kernel(s_ref, z_ref, w1s_ref, w1z_ref, w_ref, b_ref, o_ref, *,
                       action_dim):
    """One batch tile: 6 dense layers (bf16 MXU, f32 accum) + softmax."""
    s = s_ref[...].astype(jnp.bfloat16)          # (TM, state_dim)
    z = z_ref[...].astype(jnp.bfloat16)          # (TM, embedding_dim)

    def dot(h, w):
        return jnp.dot(h, w, preferred_element_type=jnp.float32)

    # fc1 with the torch concat fused: cat(s, z) @ W1 == s @ W1[:sd] + z @ W1[sd:]
    h = dot(s, w1s_ref[...]) + dot(z, w1z_ref[...]) + b_ref[0]
    h = jnp.maximum(h, 0.0)                      # (TM, 128)

    def dense_relu(h, i):
        a = dot(h.astype(jnp.bfloat16), w_ref[i]) + b_ref[i + 1]
        return jnp.maximum(a, 0.0)

    h = dense_relu(h, 0)                         # fc2   (TM, 128)
    h = dense_relu(h, 1)                         # fc21  (TM, 128)
    h = dense_relu(h, 2)                         # fc22  (cols >= 32 stay exactly 0)
    h = dense_relu(h, 3)                         # fc23  (cols >= 32 stay exactly 0)

    # fc3: padded weight columns are 0 and the padded bias lanes hold -1e30,
    # so the action-lane mask comes for free with the bias add.
    logits = dot(h.astype(jnp.bfloat16), w_ref[4]) + b_ref[5]   # (TM, 128)

    # Softmax over the action dimension (== torch Softmax(dim=0) per sample).
    m = jnp.max(logits, axis=-1, keepdims=True)
    e = jnp.exp(logits - m)
    denom = jnp.sum(e, axis=-1, keepdims=True)
    probs = e * pl.reciprocal(denom, approx=False)
    o_ref[...] = probs[:, :action_dim]           # narrow (TM, action_dim) store


def _round_up(x, m):
    return (x + m - 1) // m * m


def init_params(key, state_dim, embedding_dim, action_dim):
    """nn.Linear-style init. Weights stored as (in_features, out_features), f32."""
    dims = [
        ("fc1", state_dim + embedding_dim, 128),
        ("fc2", 128, 128),
        ("fc21", 128, 128),
        ("fc22", 128, 32),
        ("fc23", 32, 32),
        ("fc3", 32, action_dim),
    ]
    params = {}
    for name, fan_in, fan_out in dims:
        key, kw, kb = jax.random.split(key, 3)
        bound = float(fan_in) ** -0.5
        params[name + "_w"] = jax.random.uniform(
            kw, (fan_in, fan_out), jnp.float32, -bound, bound)
        params[name + "_b"] = jax.random.uniform(
            kb, (fan_out,), jnp.float32, -bound, bound)
    return params


def _pad2d(a, rows, cols):
    return jnp.pad(a, ((0, rows - a.shape[0]), (0, cols - a.shape[1])))


def _pad1d(a, n):
    return jnp.pad(a, (0, n - a.shape[0]))


def prepare_kernel_params(params, state_dim, pad=PAD):
    """Pack weights for the kernel:
       w1s / w1z : bf16 (in, 128) halves of fc1 (concat fused into two matmuls)
       w_stack   : bf16 (5, 128, 128) = fc2, fc21, fc22, fc23, fc3 (zero padded)
       b_stack   : f32  (6, 1, 128)   = biases; fc3's padded lanes hold -1e30
                   (the softmax mask) and MUST stay f32."""
    action_dim = params["fc3_b"].shape[0]
    w1 = params["fc1_w"]
    kp = {
        "w1s": w1[:state_dim].astype(jnp.bfloat16),
        "w1z": w1[state_dim:].astype(jnp.bfloat16),
    }
    kp["w_stack"] = jnp.stack([
        params["fc2_w"],
        params["fc21_w"],
        _pad2d(params["fc22_w"], pad, pad),
        _pad2d(params["fc23_w"], pad, pad),
        _pad2d(params["fc3_w"], pad, pad),
    ]).astype(jnp.bfloat16)

    b3 = jnp.full((pad,), -1e30, jnp.float32).at[:action_dim].set(
        params["fc3_b"].astype(jnp.float32))
    kp["b_stack"] = jnp.stack([
        _pad1d(params["fc1_b"], pad),
        _pad1d(params["fc2_b"], pad),
        _pad1d(params["fc21_b"], pad),
        _pad1d(params["fc22_b"], pad),
        _pad1d(params["fc23_b"], pad),
        b3,
    ]).astype(jnp.float32).reshape(6, 1, pad)
    return kp


def policy_network_forward(state, latent_code, kparams, action_dim, *, tm=512):
    """state: (B, state_dim) or (state_dim,); latent_code likewise.
    Returns per-sample action probabilities (B, action_dim) (or (action_dim,))."""
    squeeze = state.ndim == 1
    if squeeze:
        state = state[None, :]
        latent_code = latent_code[None, :]
    state = state.astype(jnp.float32)
    latent_code = latent_code.astype(jnp.float32)

    b, sd = state.shape
    ed = latent_code.shape[1]

    # Fat tiles amortize the ~0.35us per-grid-step overhead, but keep >= 2 grid
    # steps when the batch allows it so the "parallel" axis can shard across the
    # two TensorCores on v7x.  Ragged tails are handled by Pallas boundary
    # masking of the last block (no wrapper-side pad / slice).
    tm = max(8, min(tm, _round_up(b, 8)))
    if pl.cdiv(b, tm) < 2 and b > 8:
        tm = _round_up(pl.cdiv(b, 2), 8)
    n_steps = pl.cdiv(b, tm)

    wargs = (kparams["w1s"], kparams["w1z"],
             kparams["w_stack"], kparams["b_stack"])

    def resident_spec(arr):
        # Full-array block, constant block index -> stays VMEM-resident across
        # the whole batch grid (shape/ndim bound per call; no late-binding bug).
        nd = arr.ndim
        return pl.BlockSpec(tuple(arr.shape), lambda i, _nd=nd: (0,) * _nd)

    in_specs = ([pl.BlockSpec((tm, sd), lambda i: (i, 0)),
                 pl.BlockSpec((tm, ed), lambda i: (i, 0))]
                + [resident_spec(w) for w in wargs])
    out_spec = pl.BlockSpec((tm, action_dim), lambda i: (i, 0))

    weight_bytes = (sd + ed + 5 * PAD) * PAD * 2 + 6 * PAD * 4
    cost = pl.CostEstimate(
        flops=2 * b * PAD * (sd + ed + 5 * PAD),
        transcendentals=b * PAD,
        bytes_accessed=b * (sd + ed) * 4 + b * action_dim * 4 + weight_bytes,
    )

    out = pl.pallas_call(
        functools.partial(_policy_mlp_kernel, action_dim=action_dim),
        out_shape=jax.ShapeDtypeStruct((b, action_dim), jnp.float32),
        grid=(n_steps,),
        in_specs=in_specs,
        out_specs=out_spec,
        compiler_params=pltpu.CompilerParams(
            dimension_semantics=("parallel",)),
        cost_estimate=cost,
    )(state, latent_code, *wargs)

    return out[0] if squeeze else out


def _reference_forward(state, latent_code, params):
    """Pure-JAX reference mirroring the kernel's precision policy
    (bf16 weights & dot inputs, f32 accumulation / bias / relu / softmax)."""
    x = jnp.concatenate([state, latent_code], axis=-1).astype(jnp.float32)

    def dense(h, w, b):
        return jnp.dot(h.astype(jnp.bfloat16), w.astype(jnp.bfloat16),
                       preferred_element_type=jnp.float32) + b

    for name in ("fc1", "fc2", "fc21", "fc22", "fc23"):
        x = jnp.maximum(dense(x, params[name + "_w"], params[name + "_b"]), 0.0)
    logits = dense(x, params["fc3_w"], params["fc3_b"])
    return jax.nn.softmax(logits, axis=-1)


if __name__ == "__main__":
    state_dim, embedding_dim, action_dim = 16, 8, 6
    batch = 256  # -> 2 parallel batch tiles of 128 (dual-TC path on v7x)

    key = jax.random.PRNGKey(0)
    key, ks, kz = jax.random.split(key, 3)
    state = jax.random.normal(ks, (batch, state_dim), jnp.float32)
    latent = jax.random.normal(kz, (batch, embedding_dim), jnp.float32)

    params = init_params(key, state_dim, embedding_dim, action_dim)
    kparams = prepare_kernel_params(params, state_dim)

    ref = _reference_forward(state, latent, params)

    # Batched path (even batch -> 2 full tiles).
    out = policy_network_forward(state, latent, kparams, action_dim)
    out = jax.block_until_ready(out)
    assert out.shape == (batch, action_dim), out.shape
    assert jnp.allclose(out, ref, atol=1e-4, rtol=1e-4), (
        float(jnp.max(jnp.abs(out - ref))))
    assert jnp.allclose(jnp.sum(out, axis=-1), 1.0, atol=1e-5)

    # Ragged batch (exercises in-kernel boundary masking; no wrapper pad/slice).
    b_ragged = 37
    out_r = policy_network_forward(state[:b_ragged], latent[:b_ragged],
                                   kparams, action_dim)
    out_r = jax.block_until_ready(out_r)
    assert out_r.shape == (b_ragged, action_dim)
    assert jnp.allclose(out_r, ref[:b_ragged], atol=1e-4, rtol=1e-4)

    # Single-sample path (matches the original 1-D PyTorch usage).
    out1 = policy_network_forward(state[0], latent[0], kparams, action_dim)
    out1 = jax.block_until_ready(out1)
    assert out1.shape == (action_dim,)
    assert jnp.allclose(out1, ref[0], atol=1e-4, rtol=1e-4)

    print("KERNEL_OK")
</pallas_src>

<mosaic_0001>
module attributes {stable_mosaic.version = 11 : i64} {
  func.func @_policy_mlp_kernel(%arg0: i32, %arg1: memref<128x16xf32, #tpu.memory_space<vmem>>, %arg2: memref<128x8xf32, #tpu.memory_space<vmem>>, %arg3: memref<16x128xbf16, #tpu.memory_space<vmem>>, %arg4: memref<8x128xbf16, #tpu.memory_space<vmem>>, %arg5: memref<5x128x128xbf16, #tpu.memory_space<vmem>>, %arg6: memref<6x1x128xf32, #tpu.memory_space<vmem>>, %arg7: memref<128x6xf32, #tpu.memory_space<vmem>>) attributes {dimension_semantics = [#tpu.dimension_semantics<parallel>], iteration_bounds = array<i64: 2>, scalar_prefetch = 0 : i64, scratch_operands = 0 : i64, tpu.core_type = #tpu.core_type<tc>, window_params = [{transform_indices = @transform_0, window_bounds = array<i64: 128, 16>}, {transform_indices = @transform_1, window_bounds = array<i64: 128, 8>}, {pipeline_mode = #tpu.pipeline_mode<synchronous>, transform_indices = @transform_2, window_bounds = array<i64: 16, 128>}, {pipeline_mode = #tpu.pipeline_mode<synchronous>, transform_indices = @transform_3, window_bounds = array<i64: 8, 128>}, {pipeline_mode = #tpu.pipeline_mode<synchronous>, transform_indices = @transform_4, window_bounds = array<i64: 5, 128, 128>}, {pipeline_mode = #tpu.pipeline_mode<synchronous>, transform_indices = @transform_5, window_bounds = array<i64: 6, 1, 128>}, {transform_indices = @transform_6, window_bounds = array<i64: 128, 6>}]} {
    %c0 = arith.constant 0 : index
    %c0_0 = arith.constant 0 : index
    %0 = vector.load %arg1[%c0, %c0_0] : memref<128x16xf32, #tpu.memory_space<vmem>>, vector<128x16xf32>
    %1 = arith.truncf %0 : vector<128x16xf32> to vector<128x16xbf16>
    %c0_1 = arith.constant 0 : index
    %c0_2 = arith.constant 0 : index
    %2 = vector.load %arg2[%c0_1, %c0_2] : memref<128x8xf32, #tpu.memory_space<vmem>>, vector<128x8xf32>
    %3 = arith.truncf %2 : vector<128x8xf32> to vector<128x8xbf16>
    %c0_3 = arith.constant 0 : index
    %c0_4 = arith.constant 0 : index
    %4 = vector.load %arg3[%c0_3, %c0_4] : memref<16x128xbf16, #tpu.memory_space<vmem>>, vector<16x128xbf16>
    %cst = arith.constant dense<0.000000e+00> : vector<128x128xf32>
    %5 = tpu.matmul %1, %4, %cst {dimension_numbers = #tpu.dot_dimension_numbers<[1], [0], [0], [1], [0, 0, 1, 1], [], []>} : vector<128x16xbf16>, vector<16x128xbf16>, vector<128x128xf32> -> vector<128x128xf32>
    %c0_5 = arith.constant 0 : index
    %c0_6 = arith.constant 0 : index
    %6 = vector.load %arg4[%c0_5, %c0_6] : memref<8x128xbf16, #tpu.memory_space<vmem>>, vector<8x128xbf16>
    %cst_7 = arith.constant dense<0.000000e+00> : vector<128x128xf32>
    %7 = tpu.matmul %3, %6, %cst_7 {dimension_numbers = #tpu.dot_dimension_numbers<[1], [0], [0], [1], [0, 0, 1, 1], [], []>} : vector<128x8xbf16>, vector<8x128xbf16>, vector<128x128xf32> -> vector<128x128xf32>
    %8 = arith.addf %5, %7 : vector<128x128xf32>
    %c0_8 = arith.constant 0 : index
    %c0_9 = arith.constant 0 : index
    %c0_10 = arith.constant 0 : index
    %9 = vector.load %arg6[%c0_8, %c0_9, %c0_10] : memref<6x1x128xf32, #tpu.memory_space<vmem>>, vector<1x1x128xf32>
    %10 = vector.shape_cast %9 : vector<1x1x128xf32> to vector<1x128xf32>
    %11 = vector.broadcast %10 : vector<1x128xf32> to vector<128x128xf32>
    %12 = arith.addf %8, %11 : vector<128x128xf32>
    %cst_11 = arith.constant 0.000000e+00 : f32
    %13 = vector.broadcast %cst_11 : f32 to vector<128x128xf32>
    %14 = arith.maximumf %12, %13 : vector<128x128xf32>
    %15 = arith.truncf %14 : vector<128x128xf32> to vector<128x128xbf16>
    %c0_12 = arith.constant 0 : index
    %c0_13 = arith.constant 0 : index
    %c0_14 = arith.constant 0 : index
    %16 = vector.load %arg5[%c0_12, %c0_13, %c0_14] : memref<5x128x128xbf16, #tpu.memory_space<vmem>>, vector<1x128x128xbf16>
    %17 = vector.shape_cast %16 : vector<1x128x128xbf16> to vector<128x128xbf16>
    %cst_15 = arith.constant dense<0.000000e+00> : vector<128x128xf32>
    %18 = tpu.matmul %15, %17, %cst_15 {dimension_numbers = #tpu.dot_dimension_numbers<[1], [0], [0], [1], [0, 0, 1, 1], [], []>} : vector<128x128xbf16>, vector<128x128xbf16>, vector<128x128xf32> -> vector<128x128xf32>
    %c1 = arith.constant 1 : index
    %c0_16 = arith.constant 0 : index
    %c0_17 = arith.constant 0 : index
    %19 = vector.load %arg6[%c1, %c0_16, %c0_17] : memref<6x1x128xf32, #tpu.memory_space<vmem>>, vector<1x1x128xf32>
    %20 = vector.shape_cast %19 : vector<1x1x128xf32> to vector<1x128xf32>
    %21 = vector.broadcast %20 : vector<1x128xf32> to vector<128x128xf32>
    %22 = arith.addf %18, %21 : vector<128x128xf32>
    %cst_18 = arith.constant 0.000000e+00 : f32
    %23 = vector.broadcast %cst_18 : f32 to vector<128x128xf32>
    %24 = arith.maximumf %22, %23 : vector<128x128xf32>
    %25 = arith.truncf %24 : vector<128x128xf32> to vector<128x128xbf16>
    %c1_19 = arith.constant 1 : index
    %c0_20 = arith.constant 0 : index
    %c0_21 = arith.constant 0 : index
    %26 = vector.load %arg5[%c1_19, %c0_20, %c0_21] : memref<5x128x128xbf16, #tpu.memory_space<vmem>>, vector<1x128x128xbf16>
    %27 = vector.shape_cast %26 : vector<1x128x128xbf16> to vector<128x128xbf16>
    %cst_22 = arith.constant dense<0.000000e+00> : vector<128x128xf32>
    %28 = tpu.matmul %25, %27, %cst_22 {dimension_numbers = #tpu.dot_dimension_numbers<[1], [0], [0], [1], [0, 0, 1, 1], [], []>} : vector<128x128xbf16>, vector<128x128xbf16>, vector<128x128xf32> -> vector<128x128xf32>
    %c2 = arith.constant 2 : index
    %c0_23 = arith.constant 0 : index
    %c0_24 = arith.constant 0 : index
    %29 = vector.load %arg6[%c2, %c0_23, %c0_24] : memref<6x1x128xf32, #tpu.memory_space<vmem>>, vector<1x1x128xf32>
    %30 = vector.shape_cast %29 : vector<1x1x128xf32> to vector<1x128xf32>
    %31 = vector.broadcast %30 : vector<1x128xf32> to vector<128x128xf32>
    %32 = arith.addf %28, %31 : vector<128x128xf32>
    %cst_25 = arith.constant 0.000000e+00 : f32
    %33 = vector.broadcast %cst_25 : f32 to vector<128x128xf32>
    %34 = arith.maximumf %32, %33 : vector<128x128xf32>
    %35 = arith.truncf %34 : vector<128x128xf32> to vector<128x128xbf16>
    %c2_26 = arith.constant 2 : index
    %c0_27 = arith.constant 0 : index
    %c0_28 = arith.constant 0 : index
    %36 = vector.load %arg5[%c2_26, %c0_27, %c0_28] : memref<5x128x128xbf16, #tpu.memory_space<vmem>>, vector<1x128x128xbf16>
    %37 = vector.shape_cast %36 : vector<1x128x128xbf16> to vector<128x128xbf16>
    %cst_29 = arith.constant dense<0.000000e+00> : vector<128x128xf32>
    %38 = tpu.matmul %35, %37, %cst_29 {dimension_numbers = #tpu.dot_dimension_numbers<[1], [0], [0], [1], [0, 0, 1, 1], [], []>} : vector<128x128xbf16>, vector<128x128xbf16>, vector<128x128xf32> -> vector<128x128xf32>
    %c3 = arith.constant 3 : index
    %c0_30 = arith.constant 0 : index
    %c0_31 = arith.constant 0 : index
    %39 = vector.load %arg6[%c3, %c0_30, %c0_31] : memref<6x1x128xf32, #tpu.memory_space<vmem>>, vector<1x1x128xf32>
    %40 = vector.shape_cast %39 : vector<1x1x128xf32> to vector<1x128xf32>
    %41 = vector.broadcast %40 : vector<1x128xf32> to vector<128x128xf32>
    %42 = arith.addf %38, %41 : vector<128x128xf32>
    %cst_32 = arith.constant 0.000000e+00 : f32
    %43 = vector.broadcast %cst_32 : f32 to vector<128x128xf32>
    %44 = arith.maximumf %42, %43 : vector<128x128xf32>
    %45 = arith.truncf %44 : vector<128x128xf32> to vector<128x128xbf16>
    %c3_33 = arith.constant 3 : index
    %c0_34 = arith.constant 0 : index
    %c0_35 = arith.constant 0 : index
    %46 = vector.load %arg5[%c3_33, %c0_34, %c0_35] : memref<5x128x128xbf16, #tpu.memory_space<vmem>>, vector<1x128x128xbf16>
    %47 = vector.shape_cast %46 : vector<1x128x128xbf16> to vector<128x128xbf16>
    %cst_36 = arith.constant dense<0.000000e+00> : vector<128x128xf32>
    %48 = tpu.matmul %45, %47, %cst_36 {dimension_numbers = #tpu.dot_dimension_numbers<[1], [0], [0], [1], [0, 0, 1, 1], [], []>} : vector<128x128xbf16>, vector<128x128xbf16>, vector<128x128xf32> -> vector<128x128xf32>
    %c4 = arith.constant 4 : index
    %c0_37 = arith.constant 0 : index
    %c0_38 = arith.constant 0 : index
    %49 = vector.load %arg6[%c4, %c0_37, %c0_38] : memref<6x1x128xf32, #tpu.memory_space<vmem>>, vector<1x1x128xf32>
    %50 = vector.shape_cast %49 : vector<1x1x128xf32> to vector<1x128xf32>
    %51 = vector.broadcast %50 : vector<1x128xf32> to vector<128x128xf32>
    %52 = arith.addf %48, %51 : vector<128x128xf32>
    %cst_39 = arith.constant 0.000000e+00 : f32
    %53 = vector.broadcast %cst_39 : f32 to vector<128x128xf32>
    %54 = arith.maximumf %52, %53 : vector<128x128xf32>
    %55 = arith.truncf %54 : vector<128x128xf32> to vector<128x128xbf16>
    %c4_40 = arith.constant 4 : index
    %c0_41 = arith.constant 0 : index
    %c0_42 = arith.constant 0 : index
    %56 = vector.load %arg5[%c4_40, %c0_41, %c0_42] : memref<5x128x128xbf16, #tpu.memory_space<vmem>>, vector<1x128x128xbf16>
    %57 = vector.shape_cast %56 : vector<1x128x128xbf16> to vector<128x128xbf16>
    %cst_43 = arith.constant dense<0.000000e+00> : vector<128x128xf32>
    %58 = tpu.matmul %55, %57, %cst_43 {dimension_numbers = #tpu.dot_dimension_numbers<[1], [0], [0], [1], [0, 0, 1, 1], [], []>} : vector<128x128xbf16>, vector<128x128xbf16>, vector<128x128xf32> -> vector<128x128xf32>
    %c5 = arith.constant 5 : index
    %c0_44 = arith.constant 0 : index
    %c0_45 = arith.constant 0 : index
    %59 = vector.load %arg6[%c5, %c0_44, %c0_45] : memref<6x1x128xf32, #tpu.memory_space<vmem>>, vector<1x1x128xf32>
    %60 = vector.shape_cast %59 : vector<1x1x128xf32> to vector<1x128xf32>
    %61 = vector.broadcast %60 : vector<1x128xf32> to vector<128x128xf32>
    %62 = arith.addf %58, %61 : vector<128x128xf32>
    %cst_46 = arith.constant dense<0xFF800000> : vector<128xf32>
    %63 = vector.multi_reduction <maximumf>, %62, %cst_46 [1] : vector<128x128xf32> to vector<128xf32>
    %64 = vector.shape_cast %63 : vector<128xf32> to vector<128x1xf32>
    %65 = vector.broadcast %64 : vector<128x1xf32> to vector<128x128xf32>
    %66 = arith.subf %62, %65 : vector<128x128xf32>
    %67 = math.exp %66 : vector<128x128xf32>
    %cst_47 = arith.constant dense<0.000000e+00> : vector<128xf32>
    %68 = vector.multi_reduction <add>, %67, %cst_47 [1] : vector<128x128xf32> to vector<128xf32>
    %69 = vector.shape_cast %68 : vector<128xf32> to vector<128x1xf32>
    %70 = tpu.reciprocal %69 : vector<128x1xf32> -> vector<128x1xf32>
    %71 = vector.broadcast %70 : vector<128x1xf32> to vector<128x128xf32>
    %72 = arith.mulf %67, %71 : vector<128x128xf32>
    %73 = vector.extract_strided_slice %72 {offsets = [0, 0], sizes = [128, 6], strides = [1, 1]} : vector<128x128xf32> to vector<128x6xf32>
    %c0_48 = arith.constant 0 : index
    %c0_49 = arith.constant 0 : index
    %74 = vector.load %arg7[%c0_48, %c0_49] : memref<128x6xf32, #tpu.memory_space<vmem>>, vector<128x6xf32>
    tpu.vector_store %arg7[%c0_48, %c0_49], %73 {strides = array<i32>} : memref<128x6xf32, #tpu.memory_space<vmem>>, vector<128x6xf32>,
    return
  }
  func.func @transform_0(%arg0: i32) -> (i32, i32) {
    %c0_i32 = arith.constant 0 : i32
    %c0_i32_0 = arith.constant 0 : i32
    return %arg0, %c0_i32 : i32, i32
  }
  func.func @transform_1(%arg0: i32) -> (i32, i32) {
    %c0_i32 = arith.constant 0 : i32
    %c0_i32_0 = arith.constant 0 : i32
    return %arg0, %c0_i32 : i32, i32
  }
  func.func @transform_2(%arg0: i32) -> (i32, i32) {
    %c0_i32 = arith.constant 0 : i32
    %c0_i32_0 = arith.constant 0 : i32
    %c0_i32_1 = arith.constant 0 : i32
    return %c0_i32, %c0_i32_0 : i32, i32
  }
  func.func @transform_3(%arg0: i32) -> (i32, i32) {
    %c0_i32 = arith.constant 0 : i32
    %c0_i32_0 = arith.constant 0 : i32
    %c0_i32_1 = arith.constant 0 : i32
    return %c0_i32, %c0_i32_0 : i32, i32
  }
  func.func @transform_4(%arg0: i32) -> (i32, i32, i32) {
    %c0_i32 = arith.constant 0 : i32
    %c0_i32_0 = arith.constant 0 : i32
    %c0_i32_1 = arith.constant 0 : i32
    %c0_i32_2 = arith.constant 0 : i32
    return %c0_i32, %c0_i32_0, %c0_i32_1 : i32, i32, i32
  }
  func.func @transform_5(%arg0: i32) -> (i32, i32, i32) {
    %c0_i32 = arith.constant 0 : i32
    %c0_i32_0 = arith.constant 0 : i32
    %c0_i32_1 = arith.constant 0 : i32
    %c0_i32_2 = arith.constant 0 : i32
    return %c0_i32, %c0_i32_0, %c0_i32_1 : i32, i32, i32
  }
  func.func @transform_6(%arg0: i32) -> (i32, i32) {
    %c0_i32 = arith.constant 0 : i32
    %c0_i32_0 = arith.constant 0 : i32
    return %arg0, %c0_i32 : i32, i32
  }
}

</mosaic_0001>

<bundles_post_ra>
// kernel: tpu_custom_call.1
= control target key start
LH: loop header
LB: loop body
LE: loop exit
PB: predicated region body
PF: predicated region fallthrough
CT: control target
= control target key end

     0   :  { %s2090_s21 = smov 0   ;;  %s2525_s0 = inlined_call_operand.vmem [shape: f32[256,16], index: 0, kind: input, shape index: {}]   ;;  %s2526_s1 = inlined_call_operand.vmem [shape: f32[256,8], index: 1, kind: input, shape index: {}]   ;;  %s2527_s2 = inlined_call_operand.vmem [shape: bf16[16,128], index: 2, kind: input, shape index: {}]   ;;  %s2528_s3 = inlined_call_operand.vmem [shape: bf16[8,128], index: 3, kind: input, shape index: {}]   ;;  %s2529_s4 = inlined_call_operand.vmem [shape: bf16[5,128,128], index: 4, kind: input, shape index: {}]   ;;  %s2530_s5 = inlined_call_operand.vmem [shape: f32[6,1,128], index: 5, kind: input, shape index: {}]   ;;  %s2531_s6 = inlined_call_operand.vmem [shape: f32[256,6], index: 6, kind: output, shape index: {}]  }
   0x1 LB: > { %s1658_s22 = sadd.s32 4294967295, %s2053_s21   ;;  %p1662_p0 = scmp.ge.s32.totalorder %s2053_s21, 1  ;;  %s2053_s21 = sphi %s2090_s21, %s16_s21  }
   0x2   : > { %p224_p1 = scmp.lt.s32.totalorder %s2053_s21, 3 }
   0x4   : > { %p225_p2 = pnand %p1662_p0, %p224_p1 }
   0x5   : > { %s1663_s27 = sshll.u32 (!%p225_p2), %s1658_s22, 4 }
   0x6   : > { %228 = sbr.rel (%p225_p2) target bundleno = 1249 (0x4e1), region = 44  ;;  %p260_p3 = scmp.lt.s32.totalorder (!%p225_p2), %s1663_s27, 31 }
   0xb   : > { %v328_v0 = vld [vmem:[%s2528_s3] sm:$0xf]  ;;  %vm354_vm0 = vcmask 1043456   ;;  %s2533_s27 = smov (!%p260_p3, %s1663_s27), 31  ;;  %vm329_vm1 = vcmask 64512   ;;  %vm413_vm2 = vcmask 130048  }
   0xc   : > { %v1920_v1 = vld [vmem:[%s2527_s2] sm:$0xff]  ;;  %v356_v2 = vsel %vm354_vm0, %v328_v0, 0  ;;  %s2104_s28 = sshll.u32 %s2533_s27, 3  ;;  %v1928_v33 = vld [vmem:[%s2529_s4 + $0x38] sm:$0xff]  ;;  %v1927_v40 = vld [vmem:[%s2529_s4 + $0x30] sm:$0xff]  ;;  %vm1573_vm7 = vcmask 48128  }
   0xd   : > { %365 = vmatpush.bf16.msra.mxu0 %v356_v2  ;;  %445 = vmatpush.bf16.msra.mxu1 %v1920_v1  ;;  %s2110_s7 = scalar_lea.vmem %s2526_s1, %s2104_s28  ;;  %s2118_s10 = scalar_lea.vmem %s2525_s0, %s2104_s28  ;;  %v1926_v41 = vld [vmem:[%s2529_s4 + $0x28] sm:$0xff]  ;;  %v1925_v42 = vld [vmem:[%s2529_s4 + $0x20] sm:$0xff]  ;;  %v1924_v49 = vld [vmem:[%s2529_s4 + $0x18] sm:$0xff] }
   0xe   : > { %v302_v3 = vld [vmem:[%s2110_s7] sm:$0xff]  ;;  %v303_v4 = vld [vmem:[%s2110_s7 + $0x8] sm:$0xff]  ;;  %v304_v9 = vld [vmem:[%s2110_s7 + $0x10] sm:$0xff]  ;;  %600 = vmatpush.bf16.msra.mxu2 %v1928_v33  ;;  %1961 = vmatpush.bf16.msra.mxu3 %v1928_v33  ;;  %s2472_s17 = scalar_lea.vmem %s2531_s6, %s2104_s28 }
   0xf   : > { %v318_v5 = vpack.c.bf16 %v303_v4, %v302_v3  ;;  %v278_v6 = vld [vmem:[%s2118_s10] sm:$0xff]  ;;  %v279_v7 = vld [vmem:[%s2118_s10 + $0x8] sm:$0xff]  ;;  %v305_v10 = vld [vmem:[%s2110_s7 + $0x18] sm:$0xff] }
  0x10   : > { %v294_v8 = vpack.c.bf16 %v279_v7, %v278_v6  ;;  %v280_v11 = vld [vmem:[%s2118_s10 + $0x10] sm:$0xff]  ;;  %v281_v12 = vld [vmem:[%s2118_s10 + $0x18] sm:$0xff]  ;;  %v319_v13 = vpack.c.bf16 %v305_v10, %v304_v9  ;;  %v306_v15 = vld [vmem:[%s2110_s7 + $0x20] sm:$0xff] }
  0x11   : > { %1669 = vmatmul.msk.bf16.vlgmr.msra.gmra.mxu0 %vm329_vm1, %v318_v5  ;;  %v295_v14 = vpack.c.bf16 %v281_v12, %v280_v11  ;;  %v307_v16 = vld [vmem:[%s2110_s7 + $0x28] sm:$0xff]  ;;  %v282_v17 = vld [vmem:[%s2118_s10 + $0x20] sm:$0xff]  ;;  %v308_v21 = vld [vmem:[%s2110_s7 + $0x30] sm:$0xff] }
  0x12   : > { %1681 = vmatmul.msk.bf16.vlgmr.msra.gmra.mxu1 %vm413_vm2, %v294_v8  ;;  %v283_v18 = vld [vmem:[%s2118_s10 + $0x28] sm:$0xff]  ;;  %v320_v19 = vpack.c.bf16 %v307_v16, %v306_v15  ;;  %v309_v22 = vld [vmem:[%s2110_s7 + $0x38] sm:$0xff]  ;;  %v284_v23 = vld [vmem:[%s2118_s10 + $0x30] sm:$0xff]  ;;  %601 = vmatpush.bf16.msra.mxu2 %v1927_v40 }
  0x13   : > { %v296_v20 = vpack.c.bf16 %v283_v18, %v282_v17  ;;  %v285_v24 = vld [vmem:[%s2118_s10 + $0x38] sm:$0xff]  ;;  %v321_v25 = vpack.c.bf16 %v309_v22, %v308_v21  ;;  %v310_v27 = vld [vmem:[%s2110_s7 + $0x40] sm:$0xff]  ;;  %v311_v28 = vld [vmem:[%s2110_s7 + $0x48] sm:$0xff]  ;;  %1962 = vmatpush.bf16.msra.mxu3 %v1927_v40 }
  0x14   : > { %v297_v26 = vpack.c.bf16 %v285_v24, %v284_v23  ;;  %v286_v29 = vld [vmem:[%s2118_s10 + $0x40] sm:$0xff]  ;;  %v287_v30 = vld [vmem:[%s2118_s10 + $0x48] sm:$0xff]  ;;  %v322_v31 = vpack.c.bf16 %v311_v28, %v310_v27  ;;  %v312_v34 = vld [vmem:[%s2110_s7 + $0x50] sm:$0xff] }
  0x15   : > { %v298_v32 = vpack.c.bf16 %v287_v30, %v286_v29  ;;  %v313_v35 = vld [vmem:[%s2110_s7 + $0x58] sm:$0xff]  ;;  %v288_v36 = vld [vmem:[%s2118_s10 + $0x50] sm:$0xff]  ;;  %v314_v43 = vld [vmem:[%s2110_s7 + $0x60] sm:$0xff] }
  0x16   : > { %v289_v37 = vld [vmem:[%s2118_s10 + $0x58] sm:$0xff]  ;;  %v323_v38 = vpack.c.bf16 %v313_v35, %v312_v34  ;;  %602 = vmatpush.bf16.msra.mxu2 %v1926_v41  ;;  %v315_v44 = vld [vmem:[%s2110_s7 + $0x68] sm:$0xff]  ;;  %v290_v45 = vld [vmem:[%s2118_s10 + $0x60] sm:$0xff] }
  0x17   : > { %v299_v39 = vpack.c.bf16 %v289_v37, %v288_v36  ;;  %1963 = vmatpush.bf16.msra.mxu3 %v1926_v41  ;;  %v291_v46 = vld [vmem:[%s2118_s10 + $0x68] sm:$0xff]  ;;  %v324_v47 = vpack.c.bf16 %v315_v44, %v314_v43  ;;  %v1923_v50 = vld [vmem:[%s2529_s4 + $0x10] sm:$0xff]  ;;  %v317_v53 = vld [vmem:[%s2110_s7 + $0x78] sm:$0xff] }
  0x18   : > { %v300_v48 = vpack.c.bf16 %v291_v46, %v290_v45  ;;  %v1922_v51 = vld [vmem:[%s2529_s4 + $0x8] sm:$0xff]  ;;  %v316_v52 = vld [vmem:[%s2110_s7 + $0x70] sm:$0xff]  ;;  %v1921_v54 = vld [vmem:[%s2529_s4] sm:$0xff] }
  0x19   : > { %v292_v55 = vld [vmem:[%s2118_s10 + $0x70] sm:$0xff]  ;;  %v293_v56 = vld [vmem:[%s2118_s10 + $0x78] sm:$0xff]  ;;  %v325_v57 = vpack.c.bf16 %v317_v53, %v316_v52  ;;  %v2193_v62 = vld [vmem:[%s2530_s5] ss:$0 sm:$0xff] }
  0x1a   : > { %603 = vmatpush.bf16.msra.mxu2 %v1925_v42  ;;  %v301_v58 = vpack.c.bf16 %v293_v56, %v292_v55  ;;  %v1936_v21 = vld [vmem:[%s2529_s4 + $0x78] sm:$0xff]  ;;  %v1935_v29 = vld [vmem:[%s2529_s4 + $0x70] sm:$0xff]  ;;  %v1934_v41 = vld [vmem:[%s2529_s4 + $0x68] sm:$0xff] }
  0x1b   : > { %1964 = vmatpush.bf16.msra.mxu3 %v1925_v42  ;;  %v1933_v46 = vld [vmem:[%s2529_s4 + $0x60] sm:$0xff] }
  0x1e   : > { %604 = vmatpush.bf16.msra.mxu2 %v1924_v49 }
  0x1f   : > { %1965 = vmatpush.bf16.msra.mxu3 %v1924_v49 }
  0x21   : > { %1670 = vmatmul.msk.bf16.gmra.mxu0 %vm329_vm1, %v319_v13 }
  0x22   : > { %1682 = vmatmul.msk.bf16.gmra.mxu1 %vm413_vm2, %v295_v14  ;;  %605 = vmatpush.bf16.msra.mxu2 %v1923_v50 }
  0x23   : > { %1966 = vmatpush.bf16.msra.mxu3 %v1923_v50 }
  0x26   : > { %606 = vmatpush.bf16.msra.mxu2 %v1922_v51 }
  0x27   : > { %1967 = vmatpush.bf16.msra.mxu3 %v1922_v51 }
  0x2a   : > { %607 = vmatpush.bf16.msra.mxu2 %v1921_v54 }
  0x2b   : > { %1968 = vmatpush.bf16.msra.mxu3 %v1921_v54 }
  0x2f   : > { %743 = vmatpush.bf16.msrb.mxu3 %v1936_v21  ;;  %v1929_v21 = vld [vmem:[%s2529_s4 + $0x40] sm:$0xff] }
  0x31   : > { %1671 = vmatmul.msk.bf16.gmra.mxu0 %vm329_vm1, %v320_v19 }
  0x32   : > { %1683 = vmatmul.msk.bf16.gmra.mxu1 %vm413_vm2, %v296_v20 }
  0x33   : > { %744 = vmatpush.bf16.msrb.mxu3 %v1935_v29 }
  0x37   : > { %745 = vmatpush.bf16.msrb.mxu3 %v1934_v41 }
  0x3b   : > { %746 = vmatpush.bf16.msrb.mxu3 %v1933_v46  ;;  %v1942_v46 = vld [vmem:[%s2529_s4 + $0xa8] sm:$0xff] }
  0x41   : > { %1672 = vmatmul.msk.bf16.gmra.mxu0 %vm329_vm1, %v321_v25 }
  0x42   : > { %1684 = vmatmul.msk.bf16.gmra.mxu1 %vm413_vm2, %v297_v26 }
  0x51   : > { %1673 = vmatmul.msk.bf16.gmra.mxu0 %vm329_vm1, %v322_v31 }
  0x52   : > { %1685 = vmatmul.msk.bf16.gmra.mxu1 %vm413_vm2, %v298_v32 }
  0x61   : > { %1674 = vmatmul.msk.bf16.gmra.mxu0 %vm329_vm1, %v323_v38 }
  0x62   : > { %1686 = vmatmul.msk.bf16.gmra.mxu1 %vm413_vm2, %v299_v39 }
  0x71   : > { %1675 = vmatmul.msk.bf16.gmra.mxu0 %vm329_vm1, %v324_v47 }
  0x72   : > { %1687 = vmatmul.msk.bf16.gmra.mxu1 %vm413_vm2, %v300_v48 }
  0x81   : > { %1676 = vmatmul.msk.bf16.gmra.mxu0 %vm329_vm1, %v325_v57 }
  0x82   : > { %1688 = vmatmul.msk.bf16.gmra.mxu1 %vm413_vm2, %v301_v58  ;;  %v1932_v58 = vld [vmem:[%s2529_s4 + $0x58] sm:$0xff] }
  0x83   : > { %747 = vmatpush.bf16.msrb.mxu3 %v1932_v58 }
  0x8e   : > { %v367_v59 = vpop.f32.mrf.mxu0 }
  0x8f   : > { %v447_v60 = vpop.f32.mrf.mxu1 }
  0x90   : > { %v448_v61 = vadd.f32 %v447_v60, %v367_v59 }
  0x92   : > { %v491_v1 = vadd.f32 %v2193_v62, %v448_v61 }
  0x94   : > { %v507_v4 = vmax.f32 %v491_v1, 0.0 }
  0x96   : > { %v369_v63 = vpop.f32.mrf.mxu0 }
  0x97   : > { %v449_v0 = vpop.f32.mrf.mxu1 }
  0x98   : > { %v450_v2 = vadd.f32 %v449_v0, %v369_v63 }
  0x9a   : > { %v492_v3 = vadd.f32 %v2193_v62, %v450_v2 }
  0x9c   : > { %v508_v5 = vmax.f32 %v492_v3, 0.0  ;;  %v1931_v3 = vld [vmem:[%s2529_s4 + $0x50] sm:$0xff] }
  0x9d   : > { %748 = vmatpush.bf16.msrb.mxu3 %v1931_v3 }
  0x9e   : > { %v372_v6 = vpop.f32.mrf.mxu0  ;;  %v523_v7 = vpack.c.bf16 %v508_v5, %v507_v4 }
  0x9f   : > { %v452_v8 = vpop.f32.mrf.mxu1 }
  0xa0   : > { %608 = vmatmul.bf16.vlgmr.msra.gmra.mxu2 %v523_v7  ;;  %v453_v9 = vadd.f32 %v452_v8, %v372_v6  ;;  %v1930_v7 = vld [vmem:[%s2529_s4 + $0x48] sm:$0xff] }
  0xa1   : > { %749 = vmatpush.bf16.msrb.mxu3 %v1930_v7  ;;  %v1939_v7 = vld [vmem:[%s2529_s4 + $0x90] sm:$0xff] }
  0xa2   : > { %v493_v12 = vadd.f32 %v2193_v62, %v453_v9 }
  0xa4   : > { %v509_v15 = vmax.f32 %v493_v12, 0.0 }
  0xa5   : > { %750 = vmatpush.bf16.msrb.mxu3 %v1929_v21 }
  0xa6   : > { %v374_v10 = vpop.f32.mrf.mxu0 }
  0xa7   : > { %v454_v11 = vpop.f32.mrf.mxu1 }
  0xa8   : > { %v455_v13 = vadd.f32 %v454_v11, %v374_v10 }
  0xaa   : > { %v494_v14 = vadd.f32 %v2193_v62, %v455_v13 }
  0xac   : > { %v510_v16 = vmax.f32 %v494_v14, 0.0 }
  0xae   : > { %v377_v17 = vpop.f32.mrf.mxu0  ;;  %v524_v18 = vpack.c.bf16 %v510_v16, %v509_v15 }
  0xaf   : > { %v457_v19 = vpop.f32.mrf.mxu1 }
  0xb0   : > { %613 = vmatmul.bf16.gmra.mxu2 %v524_v18  ;;  %v458_v20 = vadd.f32 %v457_v19, %v377_v17 }
  0xb2   : > { %v495_v24 = vadd.f32 %v2193_v62, %v458_v20 }
  0xb4   : > { %v511_v27 = vmax.f32 %v495_v24, 0.0 }
  0xb6   : > { %v379_v22 = vpop.f32.mrf.mxu0 }
  0xb7   : > { %v459_v23 = vpop.f32.mrf.mxu1 }
  0xb8   : > { %v460_v25 = vadd.f32 %v459_v23, %v379_v22 }
  0xba   : > { %v496_v26 = vadd.f32 %v2193_v62, %v460_v25 }
  0xbc   : > { %v512_v28 = vmax.f32 %v496_v26, 0.0 }
  0xbe   : > { %v382_v30 = vpop.f32.mrf.mxu0  ;;  %v525_v31 = vpack.c.bf16 %v512_v28, %v511_v27 }
  0xbf   : > { %v462_v32 = vpop.f32.mrf.mxu1 }
  0xc0   : > { %618 = vmatmul.bf16.vlgmr.msra.gmra.mxu3 %v525_v31  ;;  %v463_v33 = vadd.f32 %v462_v32, %v382_v30  ;;  %v2238_v30 = vld [vmem:[%s2530_s5 + $0x1] ss:$0 sm:$0xff]  ;;  %v1944_v31 = vld [vmem:[%s2529_s4 + $0xb8] sm:$0xff] }
  0xc1   : > { %886 = vmatpush.bf16.msrb.mxu0 %v1944_v31  ;;  %v1952_v31 = vld [vmem:[%s2529_s4 + $0xf8] sm:$0xff] }
  0xc2   : > { %v497_v36 = vadd.f32 %v2193_v62, %v463_v33  ;;  %1029 = vmatpush.bf16.msrb.mxu1 %v1952_v31 }
  0xc4   : > { %v513_v39 = vmax.f32 %v497_v36, 0.0 }
  0xc6   : > { %v384_v34 = vpop.f32.mrf.mxu0 }
  0xc7   : > { %v464_v35 = vpop.f32.mrf.mxu1 }
  0xc8   : > { %v465_v37 = vadd.f32 %v464_v35, %v384_v34 }
  0xca   : > { %v498_v38 = vadd.f32 %v2193_v62, %v465_v37 }
  0xcc   : > { %v514_v40 = vmax.f32 %v498_v38, 0.0  ;;  %v1943_v38 = vld [vmem:[%s2529_s4 + $0xb0] sm:$0xff] }
  0xcd   : > { %887 = vmatpush.bf16.msrb.mxu0 %v1943_v38 }
  0xce   : > { %v387_v42 = vpop.f32.mrf.mxu0  ;;  %v526_v43 = vpack.c.bf16 %v514_v40, %v513_v39 }
  0xcf   : > { %v467_v44 = vpop.f32.mrf.mxu1 }
  0xd0   : > { %623 = vmatmul.bf16.gmra.mxu3 %v526_v43  ;;  %v468_v45 = vadd.f32 %v467_v44, %v387_v42 }
  0xd1   : > { %888 = vmatpush.bf16.msrb.mxu0 %v1942_v46 }
  0xd2   : > { %v499_v49 = vadd.f32 %v2193_v62, %v468_v45 }
  0xd4   : > { %v515_v52 = vmax.f32 %v499_v49, 0.0 }
  0xd6   : > { %v389_v47 = vpop.f32.mrf.mxu0 }
  0xd7   : > { %v469_v48 = vpop.f32.mrf.mxu1 }
  0xd8   : > { %v470_v50 = vadd.f32 %v469_v48, %v389_v47 }
  0xda   : > { %v500_v51 = vadd.f32 %v2193_v62, %v470_v50 }
  0xdc   : > { %v516_v53 = vmax.f32 %v500_v51, 0.0 }
  0xde   : > { %v392_v54 = vpop.f32.mrf.mxu0  ;;  %v527_v55 = vpack.c.bf16 %v516_v53, %v515_v52 }
  0xdf   : > { %v472_v56 = vpop.f32.mrf.mxu1 }
  0xe0   : > { %628 = vmatmul.bf16.gmra.mxu3 %v527_v55  ;;  %v473_v57 = vadd.f32 %v472_v56, %v392_v54  ;;  %v1941_v54 = vld [vmem:[%s2529_s4 + $0xa0] sm:$0xff] }
  0xe1   : > { %889 = vmatpush.bf16.msrb.mxu0 %v1941_v54  ;;  %v1949_v54 = vld [vmem:[%s2529_s4 + $0xe0] sm:$0xff] }
  0xe2   : > { %v501_v61 = vadd.f32 %v2193_v62, %v473_v57 }
  0xe4   : > { %v517_v1 = vmax.f32 %v501_v61, 0.0 }
  0xe6   : > { %v394_v59 = vpop.f32.mrf.mxu0 }
  0xe7   : > { %v474_v60 = vpop.f32.mrf.mxu1 }
  0xe8   : > { %v475_v63 = vadd.f32 %v474_v60, %v394_v59 }
  0xea   : > { %v502_v0 = vadd.f32 %v2193_v62, %v475_v63  ;;  %v1940_v63 = vld [vmem:[%s2529_s4 + $0x98] sm:$0xff] }
  0xeb   : > { %890 = vmatpush.bf16.msrb.mxu0 %v1940_v63  ;;  %v1948_v63 = vld [vmem:[%s2529_s4 + $0xd8] sm:$0xff] }
  0xec   : > { %v518_v2 = vmax.f32 %v502_v0, 0.0 }
  0xee   : > { %v397_v4 = vpop.f32.mrf.mxu0  ;;  %v528_v5 = vpack.c.bf16 %v518_v2, %v517_v1 }
  0xef   : > { %v477_v6 = vpop.f32.mrf.mxu1  ;;  %891 = vmatpush.bf16.msrb.mxu0 %v1939_v7  ;;  %v1947_v7 = vld [vmem:[%s2529_s4 + $0xd0] sm:$0xff] }
  0xf0   : > { %633 = vmatmul.bf16.gmra.mxu3 %v528_v5  ;;  %v478_v8 = vadd.f32 %v477_v6, %v397_v4 }
  0xf2   : > { %v503_v11 = vadd.f32 %v2193_v62, %v478_v8 }
  0xf4   : > { %v519_v14 = vmax.f32 %v503_v11, 0.0 }
  0xf6   : > { %v399_v9 = vpop.f32.mrf.mxu0 }
  0xf7   : > { %v479_v10 = vpop.f32.mrf.mxu1 }
  0xf8   : > { %v480_v12 = vadd.f32 %v479_v10, %v399_v9 }
  0xfa   : > { %v504_v13 = vadd.f32 %v2193_v62, %v480_v12 }
  0xfc   : > { %v520_v15 = vmax.f32 %v504_v13, 0.0 }
  0xfe   : > { %v402_v16 = vpop.f32.mrf.mxu0  ;;  %v529_v17 = vpack.c.bf16 %v520_v15, %v519_v14  ;;  %v1938_v14 = vld [vmem:[%s2529_s4 + $0x88] sm:$0xff] }
  0xff   : > { %v482_v18 = vpop.f32.mrf.mxu1  ;;  %892 = vmatpush.bf16.msrb.mxu0 %v1938_v14 }
 0x100   : > { %638 = vmatmul.bf16.gmra.mxu3 %v529_v17  ;;  %v483_v19 = vadd.f32 %v482_v18, %v402_v16  ;;  %v1937_v16 = vld [vmem:[%s2529_s4 + $0x80] sm:$0xff] }
 0x102   : > { %v505_v23 = vadd.f32 %v2193_v62, %v483_v19 }
 0x103   : > { %893 = vmatpush.bf16.msrb.mxu0 %v1937_v16  ;;  %v1945_v16 = vld [vmem:[%s2529_s4 + $0xc0] sm:$0xff] }
 0x104   : > { %v521_v26 = vmax.f32 %v505_v23, 0.0 }
 0x106   : > { %v404_v20 = vpop.f32.mrf.mxu0 }
 0x107   : > { %v484_v22 = vpop.f32.mrf.mxu1 }
 0x108   : > { %v485_v24 = vadd.f32 %v484_v22, %v404_v20 }
 0x10a   : > { %v506_v25 = vadd.f32 %v2193_v62, %v485_v24 }
 0x10c   : > { %v522_v27 = vmax.f32 %v506_v25, 0.0 }
 0x10e   : > { %v530_v28 = vpack.c.bf16 %v522_v27, %v521_v26 }
 0x110   : > { %643 = vmatmul.bf16.gmra.mxu3 %v530_v28 }
 0x123   : > { %v609_v29 = vpop.f32.mrf.mxu2 }
 0x124   : > { %v610_v32 = vadd.f32 %v2238_v30, %v609_v29 }
 0x126   : > { %v649_v34 = vmax.f32 %v610_v32, 0.0 }
 0x12b   : > { %v611_v33 = vpop.f32.mrf.mxu2 }
 0x12c   : > { %v612_v62 = vadd.f32 %v2238_v30, %v611_v33  ;;  %v2286_v33 = vld [vmem:[%s2530_s5 + $0x2] ss:$0 sm:$0xff] }
 0x12e   : > { %v650_v35 = vmax.f32 %v612_v62, 0.0 }
 0x130   : > { %v665_v36 = vpack.c.bf16 %v650_v35, %v649_v34 }
 0x132   : > { %751 = vmatmul.bf16.vlgmr.msrb.gmra.mxu3 %v665_v36 }
 0x133   : > { %v614_v37 = vpop.f32.mrf.mxu2 }
 0x134   : > { %v615_v39 = vadd.f32 %v2238_v30, %v614_v37  ;;  %v1951_v37 = vld [vmem:[%s2529_s4 + $0xf0] sm:$0xff] }
 0x135   : > { %1030 = vmatpush.bf16.msrb.mxu1 %v1951_v37 }
 0x136   : > { %v651_v42 = vmax.f32 %v615_v39, 0.0 }
 0x13b   : > { %v616_v40 = vpop.f32.mrf.mxu2 }
 0x13c   : > { %v617_v41 = vadd.f32 %v2238_v30, %v616_v40 }
 0x13e   : > { %v652_v43 = vmax.f32 %v617_v41, 0.0 }
 0x140   : > { %v666_v44 = vpack.c.bf16 %v652_v43, %v651_v42 }
 0x142   : > { %756 = vmatmul.bf16.gmra.mxu3 %v666_v44 }
 0x143   : > { %v619_v45 = vpop.f32.mrf.mxu3 }
 0x144   : > { %v620_v47 = vadd.f32 %v2238_v30, %v619_v45  ;;  %v1950_v45 = vld [vmem:[%s2529_s4 + $0xe8] sm:$0xff] }
 0x145   : > { %1031 = vmatpush.bf16.msrb.mxu1 %v1950_v45 }
 0x146   : > { %v653_v50 = vmax.f32 %v620_v47, 0.0 }
 0x149   : > { %1032 = vmatpush.bf16.msrb.mxu1 %v1949_v54 }
 0x14b   : > { %v621_v48 = vpop.f32.mrf.mxu3 }
 0x14c   : > { %v622_v49 = vadd.f32 %v2238_v30, %v621_v48 }
 0x14d   : > { %1033 = vmatpush.bf16.msrb.mxu1 %v1948_v63 }
 0x14e   : > { %v654_v51 = vmax.f32 %v622_v49, 0.0 }
 0x150   : > { %v667_v52 = vpack.c.bf16 %v654_v51, %v653_v50 }
 0x151   : > { %1034 = vmatpush.bf16.msrb.mxu1 %v1947_v7  ;;  %v1960_v7 = vld [vmem:[%s2529_s4 + $0x138] sm:$0xff] }
 0x152   : > { %761 = vmatmul.bf16.gmra.mxu3 %v667_v52  ;;  %1172 = vmatpush.bf16.msrb.mxu2 %v1960_v7 }
 0x153   : > { %v624_v53 = vpop.f32.mrf.mxu3 }
 0x154   : > { %v625_v55 = vadd.f32 %v2238_v30, %v624_v53 }
 0x156   : > { %v655_v58 = vmax.f32 %v625_v55, 0.0 }
 0x15b   : > { %v626_v56 = vpop.f32.mrf.mxu3 }
 0x15c   : > { %v627_v57 = vadd.f32 %v2238_v30, %v626_v56 }
 0x15e   : > { %v656_v59 = vmax.f32 %v627_v57, 0.0 }
 0x160   : > { %v668_v60 = vpack.c.bf16 %v656_v59, %v655_v58 }
 0x162   : > { %766 = vmatmul.bf16.gmra.mxu3 %v668_v60 }
 0x163   : > { %v629_v61 = vpop.f32.mrf.mxu3 }
 0x164   : > { %v630_v0 = vadd.f32 %v2238_v30, %v629_v61 }
 0x166   : > { %v657_v3 = vmax.f32 %v630_v0, 0.0 }
 0x16b   : > { %v631_v1 = vpop.f32.mrf.mxu3 }
 0x16c   : > { %v632_v2 = vadd.f32 %v2238_v30, %v631_v1 }
 0x16e   : > { %v658_v4 = vmax.f32 %v632_v2, 0.0 }
 0x170   : > { %v669_v5 = vpack.c.bf16 %v658_v4, %v657_v3 }
 0x172   : > { %771 = vmatmul.bf16.gmra.mxu3 %v669_v5 }
 0x173   : > { %v634_v6 = vpop.f32.mrf.mxu3 }
 0x174   : > { %v635_v8 = vadd.f32 %v2238_v30, %v634_v6 }
 0x176   : > { %v659_v11 = vmax.f32 %v635_v8, 0.0 }
 0x17b   : > { %v636_v9 = vpop.f32.mrf.mxu3 }
 0x17c   : > { %v637_v10 = vadd.f32 %v2238_v30, %v636_v9 }
 0x17e   : > { %v660_v12 = vmax.f32 %v637_v10, 0.0 }
 0x180   : > { %v670_v13 = vpack.c.bf16 %v660_v12, %v659_v11 }
 0x182   : > { %776 = vmatmul.bf16.gmra.mxu3 %v670_v13 }
 0x183   : > { %v639_v15 = vpop.f32.mrf.mxu3 }
 0x184   : > { %v640_v17 = vadd.f32 %v2238_v30, %v639_v15  ;;  %v1946_v15 = vld [vmem:[%s2529_s4 + $0xc8] sm:$0xff] }
 0x185   : > { %1035 = vmatpush.bf16.msrb.mxu1 %v1946_v15 }
 0x186   : > { %v661_v20 = vmax.f32 %v640_v17, 0.0 }
 0x189   : > { %1036 = vmatpush.bf16.msrb.mxu1 %v1945_v16 }
 0x18b   : > { %v641_v18 = vpop.f32.mrf.mxu3 }
 0x18c   : > { %v642_v19 = vadd.f32 %v2238_v30, %v641_v18 }
 0x18e   : > { %v662_v21 = vmax.f32 %v642_v19, 0.0 }
 0x190   : > { %v671_v22 = vpack.c.bf16 %v662_v21, %v661_v20 }
 0x192   : > { %781 = vmatmul.bf16.gmra.mxu3 %v671_v22 }
 0x193   : > { %v644_v23 = vpop.f32.mrf.mxu3 }
 0x194   : > { %v645_v24 = vadd.f32 %v2238_v30, %v644_v23 }
 0x196   : > { %v663_v27 = vmax.f32 %v645_v24, 0.0 }
 0x19b   : > { %v646_v25 = vpop.f32.mrf.mxu3 }
 0x19c   : > { %v647_v26 = vadd.f32 %v2238_v30, %v646_v25 }
 0x19e   : > { %v664_v28 = vmax.f32 %v647_v26, 0.0 }
 0x1a0   : > { %v672_v29 = vpack.c.bf16 %v664_v28, %v663_v27 }
 0x1a2   : > { %786 = vmatmul.bf16.gmra.mxu3 %v672_v29 }
 0x1b5   : > { %v752_v32 = vpop.f32.mrf.mxu3 }
 0x1b6   : > { %v753_v62 = vadd.f32 %v2286_v33, %v752_v32 }
 0x1b8   : > { %v792_v35 = vmax.f32 %v753_v62, 0.0  ;;  %v2328_v62 = vld [vmem:[%s2530_s5 + $0x3] ss:$0 sm:$0xff] }
 0x1bd   : > { %v754_v34 = vpop.f32.mrf.mxu3 }
 0x1be   : > { %v755_v30 = vadd.f32 %v2286_v33, %v754_v34 }
 0x1c0   : > { %v793_v36 = vmax.f32 %v755_v30, 0.0 }
 0x1c2   : > { %v808_v38 = vpack.c.bf16 %v793_v36, %v792_v35 }
 0x1c4   : > { %894 = vmatmul.bf16.vlgmr.msrb.gmra.mxu0 %v808_v38 }
 0x1c5   : > { %v757_v39 = vpop.f32.mrf.mxu3 }
 0x1c6   : > { %v758_v40 = vadd.f32 %v2286_v33, %v757_v39 }
 0x1c8   : > { %v794_v43 = vmax.f32 %v758_v40, 0.0 }
 0x1cd   : > { %v759_v41 = vpop.f32.mrf.mxu3 }
 0x1ce   : > { %v760_v42 = vadd.f32 %v2286_v33, %v759_v41 }
 0x1d0   : > { %v795_v44 = vmax.f32 %v760_v42, 0.0 }
 0x1d2   : > { %v809_v46 = vpack.c.bf16 %v795_v44, %v794_v43 }
 0x1d4   : > { %899 = vmatmul.bf16.gmra.mxu0 %v809_v46 }
 0x1d5   : > { %v762_v47 = vpop.f32.mrf.mxu3 }
 0x1d6   : > { %v763_v48 = vadd.f32 %v2286_v33, %v762_v47 }
 0x1d8   : > { %v796_v51 = vmax.f32 %v763_v48, 0.0 }
 0x1dd   : > { %v764_v49 = vpop.f32.mrf.mxu3 }
 0x1de   : > { %v765_v50 = vadd.f32 %v2286_v33, %v764_v49 }
 0x1e0   : > { %v797_v52 = vmax.f32 %v765_v50, 0.0 }
 0x1e2   : > { %v810_v53 = vpack.c.bf16 %v797_v52, %v796_v51 }
 0x1e4   : > { %904 = vmatmul.bf16.gmra.mxu0 %v810_v53 }
 0x1e5   : > { %v767_v55 = vpop.f32.mrf.mxu3 }
 0x1e6   : > { %v768_v56 = vadd.f32 %v2286_v33, %v767_v55 }
 0x1e8   : > { %v798_v59 = vmax.f32 %v768_v56, 0.0 }
 0x1ed   : > { %v769_v57 = vpop.f32.mrf.mxu3 }
 0x1ee   : > { %v770_v58 = vadd.f32 %v2286_v33, %v769_v57 }
 0x1f0   : > { %v799_v60 = vmax.f32 %v770_v58, 0.0 }
 0x1f2   : > { %v811_v61 = vpack.c.bf16 %v799_v60, %v798_v59 }
 0x1f4   : > { %909 = vmatmul.bf16.gmra.mxu0 %v811_v61 }
 0x1f5   : > { %v772_v0 = vpop.f32.mrf.mxu3 }
 0x1f6   : > { %v773_v1 = vadd.f32 %v2286_v33, %v772_v0 }
 0x1f8   : > { %v800_v4 = vmax.f32 %v773_v1, 0.0 }
 0x1fd   : > { %v774_v2 = vpop.f32.mrf.mxu3 }
 0x1fe   : > { %v775_v3 = vadd.f32 %v2286_v33, %v774_v2 }
 0x200   : > { %v801_v5 = vmax.f32 %v775_v3, 0.0 }
 0x202   : > { %v812_v6 = vpack.c.bf16 %v801_v5, %v800_v4 }
 0x204   : > { %914 = vmatmul.bf16.gmra.mxu0 %v812_v6 }
 0x205   : > { %v777_v8 = vpop.f32.mrf.mxu3 }
 0x206   : > { %v778_v9 = vadd.f32 %v2286_v33, %v777_v8 }
 0x208   : > { %v802_v12 = vmax.f32 %v778_v9, 0.0 }
 0x20d   : > { %v779_v10 = vpop.f32.mrf.mxu3 }
 0x20e   : > { %v780_v11 = vadd.f32 %v2286_v33, %v779_v10 }
 0x210   : > { %v803_v13 = vmax.f32 %v780_v11, 0.0  ;;  %v1959_v11 = vld [vmem:[%s2529_s4 + $0x130] sm:$0xff] }
 0x211   : > { %1173 = vmatpush.bf16.msrb.mxu2 %v1959_v11 }
 0x212   : > { %v813_v14 = vpack.c.bf16 %v803_v13, %v802_v12  ;;  %v1958_v13 = vld [vmem:[%s2529_s4 + $0x128] sm:$0xff] }
 0x214   : > { %919 = vmatmul.bf16.gmra.mxu0 %v813_v14  ;;  %v1957_v14 = vld [vmem:[%s2529_s4 + $0x120] sm:$0xff] }
 0x215   : > { %v782_v17 = vpop.f32.mrf.mxu3  ;;  %1174 = vmatpush.bf16.msrb.mxu2 %v1958_v13 }
 0x216   : > { %v783_v18 = vadd.f32 %v2286_v33, %v782_v17  ;;  %v1956_v17 = vld [vmem:[%s2529_s4 + $0x118] sm:$0xff] }
 0x218   : > { %v804_v21 = vmax.f32 %v783_v18, 0.0 }
 0x219   : > { %1175 = vmatpush.bf16.msrb.mxu2 %v1957_v14 }
 0x21d   : > { %v784_v19 = vpop.f32.mrf.mxu3  ;;  %1176 = vmatpush.bf16.msrb.mxu2 %v1956_v17 }
 0x21e   : > { %v785_v20 = vadd.f32 %v2286_v33, %v784_v19 }
 0x220   : > { %v805_v22 = vmax.f32 %v785_v20, 0.0 }
 0x222   : > { %v814_v23 = vpack.c.bf16 %v805_v22, %v804_v21  ;;  %v1955_v22 = vld [vmem:[%s2529_s4 + $0x110] sm:$0xff] }
 0x223   : > { %1177 = vmatpush.bf16.msrb.mxu2 %v1955_v22 }
 0x224   : > { %924 = vmatmul.bf16.gmra.mxu0 %v814_v23 }
 0x225   : > { %v787_v24 = vpop.f32.mrf.mxu3 }
 0x226   : > { %v788_v25 = vadd.f32 %v2286_v33, %v787_v24  ;;  %v1954_v24 = vld [vmem:[%s2529_s4 + $0x108] sm:$0xff] }
 0x227   : > { %1178 = vmatpush.bf16.msrb.mxu2 %v1954_v24 }
 0x228   : > { %v806_v28 = vmax.f32 %v788_v25, 0.0  ;;  %v1953_v25 = vld [vmem:[%s2529_s4 + $0x100] sm:$0xff] }
 0x22b   : > { %1179 = vmatpush.bf16.msrb.mxu2 %v1953_v25  ;;  %v1982_v25 = vld [vmem:[%s2530_s5 + $0x5] ss:$0 sm:$0xff] }
 0x22d   : > { %v789_v26 = vpop.f32.mrf.mxu3 }
 0x22e   : > { %v790_v27 = vadd.f32 %v2286_v33, %v789_v26 }
 0x230   : > { %v807_v29 = vmax.f32 %v790_v27, 0.0 }
 0x232   : > { %v815_v31 = vpack.c.bf16 %v807_v29, %v806_v28 }
 0x234   : > { %929 = vmatmul.bf16.gmra.mxu0 %v815_v31 }
 0x241   : > { %v895_v32 = vpop.f32.mrf.mxu0 }
 0x242   : > { %v896_v34 = vadd.f32 %v2328_v62, %v895_v32 }
 0x244   : > { %v935_v36 = vmax.f32 %v896_v34, 0.0 }
 0x249   : > { %v897_v30 = vpop.f32.mrf.mxu0 }
 0x24a   : > { %v898_v35 = vadd.f32 %v2328_v62, %v897_v30  ;;  %v1981_v30 = vld [vmem:[%s2530_s5 + $0x4] ss:$0 sm:$0xff] }
 0x24c   : > { %v936_v37 = vmax.f32 %v898_v35, 0.0 }
 0x24e   : > { %v951_v38 = vpack.c.bf16 %v936_v37, %v935_v36 }
 0x250   : > { %1037 = vmatmul.bf16.vlgmr.msrb.gmra.mxu1 %v951_v38 }
 0x251   : > { %v900_v33 = vpop.f32.mrf.mxu0 }
 0x252   : > { %v901_v39 = vadd.f32 %v2328_v62, %v900_v33 }
 0x254   : > { %v937_v42 = vmax.f32 %v901_v39, 0.0 }
 0x259   : > { %v902_v40 = vpop.f32.mrf.mxu0 }
 0x25a   : > { %v903_v41 = vadd.f32 %v2328_v62, %v902_v40 }
 0x25c   : > { %v938_v43 = vmax.f32 %v903_v41, 0.0 }
 0x25e   : > { %v952_v44 = vpack.c.bf16 %v938_v43, %v937_v42 }
 0x260   : > { %1042 = vmatmul.bf16.gmra.mxu1 %v952_v44 }
 0x261   : > { %v905_v45 = vpop.f32.mrf.mxu0 }
 0x262   : > { %v906_v46 = vadd.f32 %v2328_v62, %v905_v45 }
 0x264   : > { %v939_v49 = vmax.f32 %v906_v46, 0.0 }
 0x269   : > { %v907_v47 = vpop.f32.mrf.mxu0 }
 0x26a   : > { %v908_v48 = vadd.f32 %v2328_v62, %v907_v47 }
 0x26c   : > { %v940_v50 = vmax.f32 %v908_v48, 0.0 }
 0x26e   : > { %v953_v51 = vpack.c.bf16 %v940_v50, %v939_v49 }
 0x270   : > { %1047 = vmatmul.bf16.gmra.mxu1 %v953_v51 }
 0x271   : > { %v910_v52 = vpop.f32.mrf.mxu0 }
 0x272   : > { %v911_v53 = vadd.f32 %v2328_v62, %v910_v52 }
 0x274   : > { %v941_v56 = vmax.f32 %v911_v53, 0.0 }
 0x279   : > { %v912_v54 = vpop.f32.mrf.mxu0 }
 0x27a   : > { %v913_v55 = vadd.f32 %v2328_v62, %v912_v54 }
 0x27c   : > { %v942_v57 = vmax.f32 %v913_v55, 0.0 }
 0x27e   : > { %v954_v58 = vpack.c.bf16 %v942_v57, %v941_v56 }
 0x280   : > { %1052 = vmatmul.bf16.gmra.mxu1 %v954_v58 }
 0x281   : > { %v915_v59 = vpop.f32.mrf.mxu0 }
 0x282   : > { %v916_v60 = vadd.f32 %v2328_v62, %v915_v59 }
 0x284   : > { %v943_v0 = vmax.f32 %v916_v60, 0.0 }
 0x289   : > { %v917_v61 = vpop.f32.mrf.mxu0 }
 0x28a   : > { %v918_v63 = vadd.f32 %v2328_v62, %v917_v61 }
 0x28c   : > { %v944_v1 = vmax.f32 %v918_v63, 0.0 }
 0x28e   : > { %v955_v2 = vpack.c.bf16 %v944_v1, %v943_v0 }
 0x290   : > { %1057 = vmatmul.bf16.gmra.mxu1 %v955_v2 }
 0x291   : > { %v920_v3 = vpop.f32.mrf.mxu0 }
 0x292   : > { %v921_v4 = vadd.f32 %v2328_v62, %v920_v3 }
 0x294   : > { %v945_v8 = vmax.f32 %v921_v4, 0.0 }
 0x299   : > { %v922_v5 = vpop.f32.mrf.mxu0 }
 0x29a   : > { %v923_v6 = vadd.f32 %v2328_v62, %v922_v5 }
 0x29c   : > { %v946_v9 = vmax.f32 %v923_v6, 0.0 }
 0x29e   : > { %v956_v10 = vpack.c.bf16 %v946_v9, %v945_v8 }
 0x2a0   : > { %1062 = vmatmul.bf16.gmra.mxu1 %v956_v10 }
 0x2a1   : > { %v925_v12 = vpop.f32.mrf.mxu0 }
 0x2a2   : > { %v926_v15 = vadd.f32 %v2328_v62, %v925_v12 }
 0x2a4   : > { %v947_v19 = vmax.f32 %v926_v15, 0.0 }
 0x2a9   : > { %v927_v16 = vpop.f32.mrf.mxu0 }
 0x2aa   : > { %v928_v18 = vadd.f32 %v2328_v62, %v927_v16 }
 0x2ac   : > { %v948_v20 = vmax.f32 %v928_v18, 0.0 }
 0x2ae   : > { %v957_v21 = vpack.c.bf16 %v948_v20, %v947_v19 }
 0x2b0   : > { %1067 = vmatmul.bf16.gmra.mxu1 %v957_v21 }
 0x2b1   : > { %v930_v23 = vpop.f32.mrf.mxu0 }
 0x2b2   : > { %v931_v26 = vadd.f32 %v2328_v62, %v930_v23 }
 0x2b4   : > { %v949_v29 = vmax.f32 %v931_v26, 0.0 }
 0x2b9   : > { %v932_v27 = vpop.f32.mrf.mxu0 }
 0x2ba   : > { %v933_v28 = vadd.f32 %v2328_v62, %v932_v27 }
 0x2bc   : > { %v950_v31 = vmax.f32 %v933_v28, 0.0 }
 0x2be   : > { %v958_v32 = vpack.c.bf16 %v950_v31, %v949_v29 }
 0x2c0   : > { %1072 = vmatmul.bf16.gmra.mxu1 %v958_v32 }
 0x2cd   : > { %v1038_v34 = vpop.f32.mrf.mxu1 }
 0x2ce   : > { %v1039_v35 = vadd.f32 %v1981_v30, %v1038_v34 }
 0x2d0   : > { %v1078_v38 = vmax.f32 %v1039_v35, 0.0 }
 0x2d5   : > { %v1040_v36 = vpop.f32.mrf.mxu1 }
 0x2d6   : > { %v1041_v37 = vadd.f32 %v1981_v30, %v1040_v36 }
 0x2d8   : > { %v1079_v33 = vmax.f32 %v1041_v37, 0.0 }
 0x2da   : > { %v1094_v39 = vpack.c.bf16 %v1079_v33, %v1078_v38 }
 0x2dc   : > { %1180 = vmatmul.bf16.vlgmr.msrb.gmra.mxu2 %v1094_v39 }
 0x2dd   : > { %v1043_v40 = vpop.f32.mrf.mxu1 }
 0x2de   : > { %v1044_v41 = vadd.f32 %v1981_v30, %v1043_v40 }
 0x2e0   : > { %v1080_v43 = vmax.f32 %v1044_v41, 0.0 }
 0x2e5   : > { %v1045_v42 = vpop.f32.mrf.mxu1 }
 0x2e6   : > { %v1046_v62 = vadd.f32 %v1981_v30, %v1045_v42 }
 0x2e8   : > { %v1081_v44 = vmax.f32 %v1046_v62, 0.0 }
 0x2ea   : > { %v1095_v45 = vpack.c.bf16 %v1081_v44, %v1080_v43 }
 0x2ec   : > { %1185 = vmatmul.bf16.gmra.mxu2 %v1095_v45 }
 0x2ed   : > { %v1048_v46 = vpop.f32.mrf.mxu1 }
 0x2ee   : > { %v1049_v47 = vadd.f32 %v1981_v30, %v1048_v46 }
 0x2f0   : > { %v1082_v50 = vmax.f32 %v1049_v47, 0.0 }
 0x2f5   : > { %v1050_v48 = vpop.f32.mrf.mxu1 }
 0x2f6   : > { %v1051_v49 = vadd.f32 %v1981_v30, %v1050_v48 }
 0x2f8   : > { %v1083_v51 = vmax.f32 %v1051_v49, 0.0 }
 0x2fa   : > { %v1096_v52 = vpack.c.bf16 %v1083_v51, %v1082_v50 }
 0x2fc   : > { %1190 = vmatmul.bf16.gmra.mxu2 %v1096_v52 }
 0x2fd   : > { %v1053_v53 = vpop.f32.mrf.mxu1 }
 0x2fe   : > { %v1054_v54 = vadd.f32 %v1981_v30, %v1053_v53 }
 0x300   : > { %v1084_v57 = vmax.f32 %v1054_v54, 0.0 }
 0x305   : > { %v1055_v55 = vpop.f32.mrf.mxu1 }
 0x306   : > { %v1056_v56 = vadd.f32 %v1981_v30, %v1055_v55 }
 0x308   : > { %v1085_v58 = vmax.f32 %v1056_v56, 0.0 }
 0x30a   : > { %v1097_v59 = vpack.c.bf16 %v1085_v58, %v1084_v57 }
 0x30c   : > { %1195 = vmatmul.bf16.gmra.mxu2 %v1097_v59 }
 0x30d   : > { %v1058_v60 = vpop.f32.mrf.mxu1 }
 0x30e   : > { %v1059_v61 = vadd.f32 %v1981_v30, %v1058_v60 }
 0x310   : > { %v1086_v1 = vmax.f32 %v1059_v61, 0.0 }
 0x315   : > { %v1060_v63 = vpop.f32.mrf.mxu1 }
 0x316   : > { %v1061_v0 = vadd.f32 %v1981_v30, %v1060_v63 }
 0x318   : > { %v1087_v2 = vmax.f32 %v1061_v0, 0.0 }
 0x31a   : > { %v1098_v3 = vpack.c.bf16 %v1087_v2, %v1086_v1 }
 0x31c   : > { %1200 = vmatmul.bf16.gmra.mxu2 %v1098_v3 }
 0x31d   : > { %v1063_v4 = vpop.f32.mrf.mxu1 }
 0x31e   : > { %v1064_v5 = vadd.f32 %v1981_v30, %v1063_v4 }
 0x320   : > { %v1088_v8 = vmax.f32 %v1064_v5, 0.0 }
 0x325   : > { %v1065_v6 = vpop.f32.mrf.mxu1 }
 0x326   : > { %v1066_v7 = vadd.f32 %v1981_v30, %v1065_v6 }
 0x328   : > { %v1089_v9 = vmax.f32 %v1066_v7, 0.0 }
 0x32a   : > { %v1099_v10 = vpack.c.bf16 %v1089_v9, %v1088_v8 }
 0x32c   : > { %1205 = vmatmul.bf16.gmra.mxu2 %v1099_v10 }
 0x32d   : > { %v1068_v11 = vpop.f32.mrf.mxu1 }
 0x32e   : > { %v1069_v12 = vadd.f32 %v1981_v30, %v1068_v11 }
 0x330   : > { %v1090_v15 = vmax.f32 %v1069_v12, 0.0 }
 0x335   : > { %v1070_v13 = vpop.f32.mrf.mxu1 }
 0x336   : > { %v1071_v14 = vadd.f32 %v1981_v30, %v1070_v13 }
 0x338   : > { %v1091_v16 = vmax.f32 %v1071_v14, 0.0 }
 0x33a   : > { %v1100_v17 = vpack.c.bf16 %v1091_v16, %v1090_v15 }
 0x33c   : > { %1210 = vmatmul.bf16.gmra.mxu2 %v1100_v17 }
 0x33d   : > { %v1073_v18 = vpop.f32.mrf.mxu1 }
 0x33e   : > { %v1074_v19 = vadd.f32 %v1981_v30, %v1073_v18 }
 0x340   : > { %v1092_v22 = vmax.f32 %v1074_v19, 0.0 }
 0x345   : > { %v1075_v20 = vpop.f32.mrf.mxu1 }
 0x346   : > { %v1076_v21 = vadd.f32 %v1981_v30, %v1075_v20 }
 0x348   : > { %v1093_v23 = vmax.f32 %v1076_v21, 0.0 }
 0x34a   : > { %v1101_v24 = vpack.c.bf16 %v1093_v23, %v1092_v22 }
 0x34c   : > { %1215 = vmatmul.bf16.gmra.mxu2 %v1101_v24 }
 0x35f   : > { %v1181_v26 = vpop.f32.mrf.mxu2 }
 0x360   : > { %v1182_v27 = vadd.f32 %v1982_v25, %v1181_v26 }
 0x362   : > { %1221 = vmax.xlane.f32.xlu0 %v1182_v27 }
 0x367   : > { %v1183_v28 = vpop.f32.mrf.mxu2 }
 0x368   : > { %v1184_v29 = vadd.f32 %v1982_v25, %v1183_v28 }
 0x36a   : > { %1223 = vmax.xlane.f32.xlu0 %v1184_v29 }
 0x36f   : > { %v1186_v31 = vpop.f32.mrf.mxu2 }
 0x370   : > { %v1187_v32 = vadd.f32 %v1982_v25, %v1186_v31 }
 0x372   : > { %1225 = vmax.xlane.f32.xlu1 %v1187_v32 }
 0x377   : > { %v1188_v34 = vpop.f32.mrf.mxu2 }
 0x378   : > { %v1189_v35 = vadd.f32 %v1982_v25, %v1188_v34 }
 0x37a   : > { %1227 = vmax.xlane.f32.xlu1 %v1189_v35 }
 0x37f   : > { %v1191_v30 = vpop.f32.mrf.mxu2 }
 0x380   : > { %v1192_v36 = vadd.f32 %v1982_v25, %v1191_v30 }
 0x382   : > { %1229 = vmax.xlane.f32.xlu2 %v1192_v36 }
 0x387   : > { %v1193_v37 = vpop.f32.mrf.mxu2 }
 0x388   : > { %v2376_v38 = vadd.f32 %v1982_v25, %v1193_v37 }
 0x38a   : > { %1231 = vmax.xlane.f32.xlu2 %v2376_v38 }
 0x38f   : > { %v1196_v33 = vpop.f32.mrf.mxu2 }
 0x390   : > { %v2379_v39 = vadd.f32 %v1982_v25, %v1196_v33 }
 0x392   : > { %1233 = vmax.xlane.f32.xlu0 %v2379_v39 }
 0x397   : > { %v1198_v40 = vpop.f32.mrf.mxu2 }
 0x398   : > { %v2382_v41 = vadd.f32 %v1982_v25, %v1198_v40 }
 0x39a   : > { %1235 = vmax.xlane.f32.xlu1 %v2382_v41 }
 0x39f   : > { %v1201_v42 = vpop.f32.mrf.mxu2 }
 0x3a0   : > { %v2385_v62 = vadd.f32 %v1982_v25, %v1201_v42 }
 0x3a2   : > { %1237 = vmax.xlane.f32.xlu2 %v2385_v62 }
 0x3a7   : > { %v1203_v43 = vpop.f32.mrf.mxu2 }
 0x3a8   : > { %v2388_v44 = vadd.f32 %v1982_v25, %v1203_v43 }
 0x3aa   : > { %1239 = vmax.xlane.f32.xlu0 %v2388_v44 }
 0x3af   : > { %v1206_v45 = vpop.f32.mrf.mxu2 }
 0x3b0   : > { %v2391_v46 = vadd.f32 %v1982_v25, %v1206_v45 }
 0x3b2   : > { %1241 = vmax.xlane.f32.xlu1 %v2391_v46 }
 0x3b7   : > { %v1208_v47 = vpop.f32.mrf.mxu2 }
 0x3b8   : > { %v2394_v48 = vadd.f32 %v1982_v25, %v1208_v47 }
 0x3ba   : > { %1243 = vmax.xlane.f32.xlu2 %v2394_v48 }
 0x3bf   : > { %v1211_v49 = vpop.f32.mrf.mxu2 }
 0x3c0   : > { %v2397_v50 = vadd.f32 %v1982_v25, %v1211_v49 }
 0x3c2   : > { %1245 = vmax.xlane.f32.xlu0 %v2397_v50 }
 0x3c7   : > { %v1213_v51 = vpop.f32.mrf.mxu2 }
 0x3c8   : > { %v2400_v52 = vadd.f32 %v1982_v25, %v1213_v51 }
 0x3ca   : > { %1247 = vmax.xlane.f32.xlu1 %v2400_v52 }
 0x3cf   : > { %v1216_v53 = vpop.f32.mrf.mxu2 }
 0x3d0   : > { %v2403_v54 = vadd.f32 %v1982_v25, %v1216_v53 }
 0x3d2   : > { %1249 = vmax.xlane.f32.xlu2 %v2403_v54 }
 0x3d5   : > { %v1222_v55 = vpop.xlane.xlu0 %1221 }
 0x3d6   : > { %v1253_v56 = vsub.f32 %v1182_v27, %v1222_v55 }
 0x3d7   : > { %v1218_v57 = vpop.f32.mrf.mxu2 }
 0x3d8   : > { %v1269_v58 = vmul.f32 1.442695, %v1253_v56  ;;  %v2406_v59 = vadd.f32 %v1982_v25, %v1218_v57 }
 0x3da   : > { %1983 = vpow2.f32 %v1269_v58  ;;  %1251 = vmax.xlane.f32.xlu0 %v2406_v59 }
 0x3dd   : > { %v1224_v60 = vpop.xlane.xlu0 %1223 }
 0x3de   : > { %v1254_v61 = vsub.f32 %v1184_v29, %v1224_v60 }
 0x3e0   : > { %v2409_v63 = vpop.eup %1983  ;;  %v1271_v0 = vmul.f32 1.442695, %v1254_v61 }
 0x3e1   : > { %1301 = vadd.xlane.f32.xlu1 %v2409_v63 }
 0x3e2   : > { %1985 = vpow2.f32 %v1271_v0 }
 0x3e5   : > { %v1226_v1 = vpop.xlane.xlu1 %1225 }
 0x3e6   : > { %v1255_v2 = vsub.f32 %v1187_v32, %v1226_v1 }
 0x3e8   : > { %v2412_v3 = vpop.eup %1985  ;;  %v1273_v4 = vmul.f32 1.442695, %v1255_v2 }
 0x3e9   : > { %1303 = vadd.xlane.f32.xlu2 %v2412_v3 }
 0x3ea   : > { %1987 = vpow2.f32 %v1273_v4 }
 0x3ed   : > { %v1228_v5 = vpop.xlane.xlu1 %1227 }
 0x3ee   : > { %v1256_v6 = vsub.f32 %v1189_v35, %v1228_v5 }
 0x3f0   : > { %v2415_v7 = vpop.eup %1987  ;;  %v1275_v8 = vmul.f32 1.442695, %v1256_v6 }
 0x3f1   : > { %1305 = vadd.xlane.f32.xlu0 %v2415_v7 }
 0x3f2   : > { %1989 = vpow2.f32 %v1275_v8 }
 0x3f5   : > { %v1230_v9 = vpop.xlane.xlu2 %1229 }
 0x3f6   : > { %v1257_v10 = vsub.f32 %v1192_v36, %v1230_v9 }
 0x3f8   : > { %v2418_v11 = vpop.eup %1989  ;;  %v1277_v12 = vmul.f32 1.442695, %v1257_v10 }
 0x3f9   : > { %1307 = vadd.xlane.f32.xlu1 %v2418_v11 }
 0x3fa   : > { %1991 = vpow2.f32 %v1277_v12 }
 0x3fd   : > { %v1232_v13 = vpop.xlane.xlu2 %1231 }
 0x3fe   : > { %v1258_v14 = vsub.f32 %v2376_v38, %v1232_v13 }
 0x400   : > { %v2422_v15 = vpop.eup %1991  ;;  %v1279_v16 = vmul.f32 1.442695, %v1258_v14 }
 0x401   : > { %1309 = vadd.xlane.f32.xlu2 %v2422_v15 }
 0x402   : > { %1993 = vpow2.f32 %v1279_v16 }
 0x405   : > { %v1234_v17 = vpop.xlane.xlu0 %1233 }
 0x406   : > { %v1259_v18 = vsub.f32 %v2379_v39, %v1234_v17 }
 0x408   : > { %v2426_v19 = vpop.eup %1993  ;;  %v1281_v20 = vmul.f32 1.442695, %v1259_v18 }
 0x409   : > { %1311 = vadd.xlane.f32.xlu0 %v2426_v19 }
 0x40a   : > { %1995 = vpow2.f32 %v1281_v20 }
 0x40d   : > { %v1236_v21 = vpop.xlane.xlu1 %1235 }
 0x40e   : > { %v1260_v22 = vsub.f32 %v2382_v41, %v1236_v21 }
 0x410   : > { %v2430_v23 = vpop.eup %1995  ;;  %v1283_v24 = vmul.f32 1.442695, %v1260_v22 }
 0x411   : > { %1313 = vadd.xlane.f32.xlu1 %v2430_v23 }
 0x412   : > { %1997 = vpow2.f32 %v1283_v24 }
 0x415   : > { %v1238_v25 = vpop.xlane.xlu2 %1237 }
 0x416   : > { %v1261_v26 = vsub.f32 %v2385_v62, %v1238_v25 }
 0x418   : > { %v2434_v27 = vpop.eup %1997  ;;  %v1285_v28 = vmul.f32 1.442695, %v1261_v26 }
 0x419   : > { %1315 = vadd.xlane.f32.xlu2 %v2434_v27 }
 0x41a   : > { %1999 = vpow2.f32 %v1285_v28 }
 0x41d   : > { %v1240_v29 = vpop.xlane.xlu0 %1239 }
 0x41e   : > { %v1262_v31 = vsub.f32 %v2388_v44, %v1240_v29 }
 0x420   : > { %v2438_v32 = vpop.eup %1999  ;;  %v1287_v34 = vmul.f32 1.442695, %v1262_v31 }
 0x421   : > { %1317 = vadd.xlane.f32.xlu0 %v2438_v32 }
 0x422   : > { %2001 = vpow2.f32 %v1287_v34 }
 0x425   : > { %v1242_v35 = vpop.xlane.xlu1 %1241 }
 0x426   : > { %v1263_v30 = vsub.f32 %v2391_v46, %v1242_v35 }
 0x428   : > { %v2442_v36 = vpop.eup %2001  ;;  %v1289_v37 = vmul.f32 1.442695, %v1263_v30 }
 0x429   : > { %1319 = vadd.xlane.f32.xlu1 %v2442_v36 }
 0x42a   : > { %2003 = vpow2.f32 %v1289_v37 }
 0x42d   : > { %v1244_v38 = vpop.xlane.xlu2 %1243 }
 0x42e   : > { %v1264_v33 = vsub.f32 %v2394_v48, %v1244_v38 }
 0x430   : > { %v2446_v39 = vpop.eup %2003  ;;  %v1291_v40 = vmul.f32 1.442695, %v1264_v33 }
 0x431   : > { %1321 = vadd.xlane.f32.xlu2 %v2446_v39 }
 0x432   : > { %2005 = vpow2.f32 %v1291_v40 }
 0x435   : > { %v1246_v41 = vpop.xlane.xlu0 %1245 }
 0x436   : > { %v1265_v42 = vsub.f32 %v2397_v50, %v1246_v41 }
 0x438   : > { %v2450_v62 = vpop.eup %2005  ;;  %v1293_v43 = vmul.f32 1.442695, %v1265_v42 }
 0x439   : > { %1323 = vadd.xlane.f32.xlu0 %v2450_v62 }
 0x43a   : > { %2007 = vpow2.f32 %v1293_v43 }
 0x43d   : > { %v1248_v44 = vpop.xlane.xlu1 %1247 }
 0x43e   : > { %v1266_v45 = vsub.f32 %v2400_v52, %v1248_v44 }
 0x440   : > { %v2454_v46 = vpop.eup %2007  ;;  %v1295_v47 = vmul.f32 1.442695, %v1266_v45 }
 0x441   : > { %1325 = vadd.xlane.f32.xlu1 %v2454_v46 }
 0x442   : > { %2009 = vpow2.f32 %v1295_v47 }
 0x445   : > { %v1250_v48 = vpop.xlane.xlu2 %1249 }
 0x446   : > { %v1267_v49 = vsub.f32 %v2403_v54, %v1250_v48 }
 0x448   : > { %v2458_v51 = vpop.eup %2009  ;;  %v1297_v50 = vmul.f32 1.442695, %v1267_v49 }
 0x449   : > { %1327 = vadd.xlane.f32.xlu2 %v2458_v51 }
 0x44a   : > { %2011 = vpow2.f32 %v1297_v50 }
 0x44d   : > { %v1252_v53 = vpop.xlane.xlu0 %1251 }
 0x44e   : > { %v1268_v55 = vsub.f32 %v2406_v59, %v1252_v53 }
 0x450   : > { %v2462_v56 = vpop.eup %2011  ;;  %v1299_v52 = vmul.f32 1.442695, %v1268_v55 }
 0x451   : > { %1329 = vadd.xlane.f32.xlu0 %v2462_v56 }
 0x452   : > { %2013 = vpow2.f32 %v1299_v52 }
 0x454   : > { %v1302_v57 = vpop.xlane.xlu1 %1301 }
 0x455   : > { %2015 = vrcp.f32 %v1302_v57  ;;  %v1344_v1 = vand.u32 2147483648, %v1302_v57  ;;  %v1342_v2 = vand.u32 2147483647, %v1302_v57  ;;  %vm1338_vm4 = vweird.f32 %v1302_v57 }
 0x457   : > { %v1345_v6 = vor.u32 1.1754944e-38, %v1344_v1  ;;  %vm1343_vm6 = vcmp.eq.f32.partialorder %v1342_v2, 8.507059e+37 }
 0x458   : > { %v2465_v58 = vpop.eup %2013 }
 0x459   : > { %1331 = vadd.xlane.f32.xlu1 %v2465_v58 }
 0x45b   : > { %v2016_v54 = vpop.eup %2015 }
 0x45c   : > { %v1334_v60 = vmul.f32 %v2016_v54, %v1302_v57  ;;  %v1304_v61 = vpop.xlane.xlu2 %1303  ;;  %vm1339_vm3 = vweird.f32 %v2016_v54 }
 0x45d   : > { %2017 = vrcp.f32 %v1304_v61  ;;  %vm1340_vm5 = vmor %vm1338_vm4, %vm1339_vm3  ;;  %v1358_v16 = vand.u32 2147483648, %v1304_v61  ;;  %v1356_v18 = vand.u32 2147483647, %v1304_v61  ;;  %vm1352_vm9 = vweird.f32 %v1304_v61 }
 0x45e   : > { %v1335_v0 = vsub.f32 1.0, %v1334_v60 }
 0x45f   : > { %v1359_v22 = vor.u32 1.1754944e-38, %v1358_v16  ;;  %vm1357_vm11 = vcmp.eq.f32.partialorder %v1356_v18, 8.507059e+37 }
 0x460   : > { %v1336_v59 = vmul.f32 %v2016_v54, %v1335_v0 }
 0x462   : > { %v1337_v4 = vadd.f32 %v2016_v54, %v1336_v59 }
 0x463   : > { %v2018_v5 = vpop.eup %2017 }
 0x464   : > { %v1341_v8 = vsel %vm1340_vm5, %v2016_v54, %v1337_v4  ;;  %v1348_v9 = vmul.f32 %v2018_v5, %v1304_v61  ;;  %v1306_v10 = vpop.xlane.xlu0 %1305  ;;  %vm1353_vm8 = vweird.f32 %v2018_v5 }
 0x465   : > { %v1346_v12 = vsel %vm1343_vm6, %v1345_v6, %v1341_v8  ;;  %2019 = vrcp.f32 %v1306_v10  ;;  %vm1354_vm10 = vmor %vm1352_vm9, %vm1353_vm8  ;;  %v1372_v31 = vand.u32 2147483648, %v1306_v10  ;;  %v1370_v35 = vand.u32 2147483647, %v1306_v10 }
 0x466   : > { %v1557_v13 = vmul.f32 %v2409_v63, %v1346_v12  ;;  %v1349_v14 = vsub.f32 1.0, %v1348_v9  ;;  %vm1366_vm13 = vweird.f32 %v1306_v10 }
 0x467   : > { %v1373_v38 = vor.u32 1.1754944e-38, %v1372_v31  ;;  %vm1371_vm15 = vcmp.eq.f32.partialorder %v1370_v35, 8.507059e+37 }
 0x468   : > { %1574 = vst.msk [vmem:[%s2472_s17] sm:$0xff] %vm1573_vm7, %v1557_v13  ;;  %v1350_v17 = vmul.f32 %v2018_v5, %v1349_v14 }
 0x46a   : > { %v1351_v20 = vadd.f32 %v2018_v5, %v1350_v17 }
 0x46b   : > { %v2020_v21 = vpop.eup %2019 }
 0x46c   : > { %v1355_v24 = vsel %vm1354_vm10, %v2018_v5, %v1351_v20  ;;  %v1362_v25 = vmul.f32 %v2020_v21, %v1306_v10  ;;  %v1308_v26 = vpop.xlane.xlu1 %1307  ;;  %vm1367_vm12 = vweird.f32 %v2020_v21 }
 0x46d   : > { %v1360_v28 = vsel %vm1357_vm11, %v1359_v22, %v1355_v24  ;;  %2021 = vrcp.f32 %v1308_v26  ;;  %vm1368_vm14 = vmor %vm1366_vm13, %vm1367_vm12  ;;  %v1386_v44 = vand.u32 2147483648, %v1308_v26  ;;  %v1384_v47 = vand.u32 2147483647, %v1308_v26 }
 0x46e   : > { %v1558_v63 = vmul.f32 %v2412_v3, %v1360_v28  ;;  %v1363_v29 = vsub.f32 1.0, %v1362_v25  ;;  %vm1380_vm1 = vweird.f32 %v1308_v26 }
 0x46f   : > { %v1387_v50 = vor.u32 1.1754944e-38, %v1386_v44  ;;  %vm1385_vm3 = vcmp.eq.f32.partialorder %v1384_v47, 8.507059e+37 }
 0x470   : > { %1575 = vst.msk [vmem:[%s2472_s17 + $0x8] sm:$0xff] %vm1573_vm7, %v1558_v63  ;;  %v1364_v34 = vmul.f32 %v2020_v21, %v1363_v29 }
 0x472   : > { %v1365_v30 = vadd.f32 %v2020_v21, %v1364_v34 }
 0x473   : > { %v2022_v37 = vpop.eup %2021 }
 0x474   : > { %v1369_v33 = vsel %vm1368_vm14, %v2020_v21, %v1365_v30  ;;  %v1376_v40 = vmul.f32 %v2022_v37, %v1308_v26  ;;  %v1310_v41 = vpop.xlane.xlu2 %1309  ;;  %vm1381_vm0 = vweird.f32 %v2022_v37 }
 0x475   : > { %v1374_v42 = vsel %vm1371_vm15, %v1373_v38, %v1369_v33  ;;  %2023 = vrcp.f32 %v1310_v41  ;;  %vm1382_vm2 = vmor %vm1380_vm1, %vm1381_vm0  ;;  %v1400_v60 = vand.u32 2147483648, %v1310_v41  ;;  %v1398_v0 = vand.u32 2147483647, %v1310_v41 }
 0x476   : > { %v1559_v3 = vmul.f32 %v2415_v7, %v1374_v42  ;;  %v1377_v43 = vsub.f32 1.0, %v1376_v40  ;;  %vm1394_vm5 = vweird.f32 %v1310_v41 }
 0x477   : > { %v1401_v2 = vor.u32 1.1754944e-38, %v1400_v60  ;;  %vm1399_vm8 = vcmp.eq.f32.partialorder %v1398_v0, 8.507059e+37 }
 0x478   : > { %1576 = vst.msk [vmem:[%s2472_s17 + $0x10] sm:$0xff] %vm1573_vm7, %v1559_v3  ;;  %v1378_v45 = vmul.f32 %v2022_v37, %v1377_v43 }
 0x47a   : > { %v1379_v48 = vadd.f32 %v2022_v37, %v1378_v45 }
 0x47b   : > { %v2024_v49 = vpop.eup %2023 }
 0x47c   : > { %v1383_v53 = vsel %vm1382_vm2, %v2022_v37, %v1379_v48  ;;  %v1390_v55 = vmul.f32 %v2024_v49, %v1310_v41  ;;  %v1312_v52 = vpop.xlane.xlu0 %1311  ;;  %vm1395_vm4 = vweird.f32 %v2024_v49 }
 0x47d   : > { %v1388_v57 = vsel %vm1385_vm3, %v1387_v50, %v1383_v53  ;;  %2025 = vrcp.f32 %v1312_v52  ;;  %vm1396_vm6 = vmor %vm1394_vm5, %vm1395_vm4  ;;  %v1414_v10 = vand.u32 2147483648, %v1312_v52  ;;  %v1412_v13 = vand.u32 2147483647, %v1312_v52 }
 0x47e   : > { %v1560_v7 = vmul.f32 %v2418_v11, %v1388_v57  ;;  %v1391_v54 = vsub.f32 1.0, %v1390_v55  ;;  %vm1408_vm10 = vweird.f32 %v1312_v52 }
 0x47f   : > { %v1415_v17 = vor.u32 1.1754944e-38, %v1414_v10  ;;  %vm1413_vm12 = vcmp.eq.f32.partialorder %v1412_v13, 8.507059e+37 }
 0x480   : > { %1577 = vst.msk [vmem:[%s2472_s17 + $0x18] sm:$0xff] %vm1573_vm7, %v1560_v7  ;;  %v1392_v61 = vmul.f32 %v2024_v49, %v1391_v54 }
 0x482   : > { %v1393_v1 = vadd.f32 %v2024_v49, %v1392_v61 }
 0x483   : > { %v2026_v59 = vpop.eup %2025 }
 0x484   : > { %v1397_v4 = vsel %vm1396_vm6, %v2024_v49, %v1393_v1  ;;  %v1404_v5 = vmul.f32 %v2026_v59, %v1312_v52  ;;  %v1314_v6 = vpop.xlane.xlu1 %1313  ;;  %vm1409_vm9 = vweird.f32 %v2026_v59 }
 0x485   : > { %v1402_v8 = vsel %vm1399_vm8, %v1401_v2, %v1397_v4  ;;  %2027 = vrcp.f32 %v1314_v6  ;;  %vm1410_vm11 = vmor %vm1408_vm10, %vm1409_vm9  ;;  %v1428_v25 = vand.u32 2147483648, %v1314_v6  ;;  %v1426_v28 = vand.u32 2147483647, %v1314_v6 }
 0x486   : > { %v1561_v11 = vmul.f32 %v2422_v15, %v1402_v8  ;;  %v1405_v9 = vsub.f32 1.0, %v1404_v5  ;;  %vm1422_vm14 = vweird.f32 %v1314_v6 }
 0x487   : > { %v1429_v31 = vor.u32 1.1754944e-38, %v1428_v25  ;;  %vm1427_vm0 = vcmp.eq.f32.partialorder %v1426_v28, 8.507059e+37 }
 0x488   : > { %1578 = vst.msk [vmem:[%s2472_s17 + $0x20] sm:$0xff] %vm1573_vm7, %v1561_v11  ;;  %v1406_v12 = vmul.f32 %v2026_v59, %v1405_v9 }
 0x48a   : > { %v1407_v14 = vadd.f32 %v2026_v59, %v1406_v12 }
 0x48b   : > { %v2028_v16 = vpop.eup %2027 }
 0x48c   : > { %v1411_v18 = vsel %vm1410_vm11, %v2026_v59, %v1407_v14  ;;  %v1418_v20 = vmul.f32 %v2028_v16, %v1314_v6  ;;  %v1316_v21 = vpop.xlane.xlu2 %1315  ;;  %vm1423_vm13 = vweird.f32 %v2028_v16 }
 0x48d   : > { %v1416_v22 = vsel %vm1413_vm12, %v1415_v17, %v1411_v18  ;;  %2029 = vrcp.f32 %v1316_v21  ;;  %vm1424_vm15 = vmor %vm1422_vm14, %vm1423_vm13  ;;  %v1442_v33 = vand.u32 2147483648, %v1316_v21  ;;  %v1440_v41 = vand.u32 2147483647, %v1316_v21 }
 0x48e   : > { %v1562_v15 = vmul.f32 %v2426_v19, %v1416_v22  ;;  %v1419_v24 = vsub.f32 1.0, %v1418_v20  ;;  %vm1436_vm2 = vweird.f32 %v1316_v21 }
 0x48f   : > { %v1443_v43 = vor.u32 1.1754944e-38, %v1442_v33  ;;  %vm1441_vm4 = vcmp.eq.f32.partialorder %v1440_v41, 8.507059e+37 }
 0x490   : > { %1579 = vst.msk [vmem:[%s2472_s17 + $0x28] sm:$0xff] %vm1573_vm7, %v1562_v15  ;;  %v1420_v26 = vmul.f32 %v2028_v16, %v1419_v24 }
 0x492   : > { %v1421_v63 = vadd.f32 %v2028_v16, %v1420_v26 }
 0x493   : > { %v2030_v29 = vpop.eup %2029 }
 0x494   : > { %v1425_v34 = vsel %vm1424_vm15, %v2028_v16, %v1421_v63  ;;  %v1432_v35 = vmul.f32 %v2030_v29, %v1316_v21  ;;  %v1318_v30 = vpop.xlane.xlu0 %1317  ;;  %vm1437_vm1 = vweird.f32 %v2030_v29 }
 0x495   : > { %v1430_v37 = vsel %vm1427_vm0, %v1429_v31, %v1425_v34  ;;  %2031 = vrcp.f32 %v1318_v30  ;;  %vm1438_vm3 = vmor %vm1436_vm2, %vm1437_vm1  ;;  %v1456_v50 = vand.u32 2147483648, %v1318_v30  ;;  %v1454_v55 = vand.u32 2147483647, %v1318_v30 }
 0x496   : > { %v1563_v19 = vmul.f32 %v2430_v23, %v1430_v37  ;;  %v1433_v38 = vsub.f32 1.0, %v1432_v35  ;;  %vm1450_vm6 = vweird.f32 %v1318_v30 }
 0x497   : > { %v1457_v7 = vor.u32 1.1754944e-38, %v1456_v50  ;;  %vm1455_vm9 = vcmp.eq.f32.partialorder %v1454_v55, 8.507059e+37 }
 0x498   : > { %1580 = vst.msk [vmem:[%s2472_s17 + $0x30] sm:$0xff] %vm1573_vm7, %v1563_v19  ;;  %v1434_v40 = vmul.f32 %v2030_v29, %v1433_v38 }
 0x49a   : > { %v1435_v42 = vadd.f32 %v2030_v29, %v1434_v40 }
 0x49b   : > { %v2032_v3 = vpop.eup %2031 }
 0x49c   : > { %v1439_v44 = vsel %vm1438_vm3, %v2030_v29, %v1435_v42  ;;  %v1446_v45 = vmul.f32 %v2032_v3, %v1318_v30  ;;  %v1320_v47 = vpop.xlane.xlu1 %1319  ;;  %vm1451_vm5 = vweird.f32 %v2032_v3 }
 0x49d   : > { %v1444_v48 = vsel %vm1441_vm4, %v1443_v43, %v1439_v44  ;;  %2033 = vrcp.f32 %v1320_v47  ;;  %vm1452_vm8 = vmor %vm1450_vm6, %vm1451_vm5  ;;  %v1470_v59 = vand.u32 2147483648, %v1320_v47  ;;  %v1468_v4 = vand.u32 2147483647, %v1320_v47 }
 0x49e   : > { %v1564_v23 = vmul.f32 %v2434_v27, %v1444_v48  ;;  %v1447_v49 = vsub.f32 1.0, %v1446_v45  ;;  %vm1464_vm11 = vweird.f32 %v1320_v47 }
 0x49f   : > { %v1471_v8 = vor.u32 1.1754944e-38, %v1470_v59  ;;  %vm1469_vm13 = vcmp.eq.f32.partialorder %v1468_v4, 8.507059e+37 }
 0x4a0   : > { %1581 = vst.msk [vmem:[%s2472_s17 + $0x38] sm:$0xff] %vm1573_vm7, %v1564_v23  ;;  %v1448_v53 = vmul.f32 %v2032_v3, %v1447_v49 }
 0x4a2   : > { %v1449_v52 = vadd.f32 %v2032_v3, %v1448_v53 }
 0x4a3   : > { %v2034_v57 = vpop.eup %2033 }
 0x4a4   : > { %v1453_v54 = vsel %vm1452_vm8, %v2032_v3, %v1449_v52  ;;  %v1460_v60 = vmul.f32 %v2034_v57, %v1320_v47  ;;  %v1322_v61 = vpop.xlane.xlu2 %1321  ;;  %vm1465_vm10 = vweird.f32 %v2034_v57 }
 0x4a5   : > { %v1458_v0 = vsel %vm1455_vm9, %v1457_v7, %v1453_v54  ;;  %2035 = vrcp.f32 %v1322_v61  ;;  %vm1466_vm12 = vmor %vm1464_vm11, %vm1465_vm10  ;;  %v1484_v14 = vand.u32 2147483648, %v1322_v61  ;;  %v1482_v17 = vand.u32 2147483647, %v1322_v61 }
 0x4a6   : > { %v1565_v27 = vmul.f32 %v2438_v32, %v1458_v0  ;;  %v1461_v1 = vsub.f32 1.0, %v1460_v60  ;;  %vm1478_vm15 = vweird.f32 %v1322_v61 }
 0x4a7   : > { %v1485_v21 = vor.u32 1.1754944e-38, %v1484_v14  ;;  %vm1483_vm1 = vcmp.eq.f32.partialorder %v1482_v17, 8.507059e+37 }
 0x4a8   : > { %1582 = vst.msk [vmem:[%s2472_s17 + $0x40] sm:$0xff] %vm1573_vm7, %v1565_v27  ;;  %v1462_v2 = vmul.f32 %v2034_v57, %v1461_v1 }
 0x4aa   : > { %v1463_v5 = vadd.f32 %v2034_v57, %v1462_v2 }
 0x4ab   : > { %v2036_v6 = vpop.eup %2035 }
 0x4ac   : > { %v1467_v11 = vsel %vm1466_vm12, %v2034_v57, %v1463_v5  ;;  %v1474_v9 = vmul.f32 %v2036_v6, %v1322_v61  ;;  %v1324_v10 = vpop.xlane.xlu0 %1323  ;;  %vm1479_vm14 = vweird.f32 %v2036_v6 }
 0x4ad   : > { %v1472_v12 = vsel %vm1469_vm13, %v1471_v8, %v1467_v11  ;;  %2037 = vrcp.f32 %v1324_v10  ;;  %vm1480_vm0 = vmor %vm1478_vm15, %vm1479_vm14  ;;  %v1498_v28 = vand.u32 2147483648, %v1324_v10  ;;  %v1496_v29 = vand.u32 2147483647, %v1324_v10 }
 0x4ae   : > { %v1566_v32 = vmul.f32 %v2442_v36, %v1472_v12  ;;  %v1475_v13 = vsub.f32 1.0, %v1474_v9  ;;  %vm1492_vm3 = vweird.f32 %v1324_v10 }
 0x4af   : > { %v1499_v35 = vor.u32 1.1754944e-38, %v1498_v28  ;;  %vm1497_vm5 = vcmp.eq.f32.partialorder %v1496_v29, 8.507059e+37 }
 0x4b0   : > { %1583 = vst.msk [vmem:[%s2472_s17 + $0x48] sm:$0xff] %vm1573_vm7, %v1566_v32  ;;  %v1476_v16 = vmul.f32 %v2036_v6, %v1475_v13 }
 0x4b2   : > { %v1477_v18 = vadd.f32 %v2036_v6, %v1476_v16 }
 0x4b3   : > { %v2038_v20 = vpop.eup %2037 }
 0x4b4   : > { %v1481_v22 = vsel %vm1480_vm0, %v2036_v6, %v1477_v18  ;;  %v1488_v15 = vmul.f32 %v2038_v20, %v1324_v10  ;;  %v1326_v24 = vpop.xlane.xlu1 %1325  ;;  %vm1493_vm2 = vweird.f32 %v2038_v20 }
 0x4b5   : > { %v1486_v25 = vsel %vm1483_vm1, %v1485_v21, %v1481_v22  ;;  %2039 = vrcp.f32 %v1326_v24  ;;  %vm1494_vm4 = vmor %vm1492_vm3, %vm1493_vm2  ;;  %v1512_v40 = vand.u32 2147483648, %v1326_v24  ;;  %v1510_v42 = vand.u32 2147483647, %v1326_v24 }
 0x4b6   : > { %v1567_v36 = vmul.f32 %v2446_v39, %v1486_v25  ;;  %v1489_v26 = vsub.f32 1.0, %v1488_v15  ;;  %vm1506_vm8 = vweird.f32 %v1326_v24 }
 0x4b7   : > { %v1513_v44 = vor.u32 1.1754944e-38, %v1512_v40  ;;  %vm1511_vm10 = vcmp.eq.f32.partialorder %v1510_v42, 8.507059e+37 }
 0x4b8   : > { %1584 = vst.msk [vmem:[%s2472_s17 + $0x50] sm:$0xff] %vm1573_vm7, %v1567_v36  ;;  %v1490_v63 = vmul.f32 %v2038_v20, %v1489_v26 }
 0x4ba   : > { %v1491_v31 = vadd.f32 %v2038_v20, %v1490_v63 }
 0x4bb   : > { %v2040_v34 = vpop.eup %2039 }
 0x4bc   : > { %v1495_v30 = vsel %vm1494_vm4, %v2038_v20, %v1491_v31  ;;  %v1502_v37 = vmul.f32 %v2040_v34, %v1326_v24  ;;  %v1328_v19 = vpop.xlane.xlu2 %1327  ;;  %vm1507_vm6 = vweird.f32 %v2040_v34 }
 0x4bd   : > { %v1500_v38 = vsel %vm1497_vm5, %v1499_v35, %v1495_v30  ;;  %2041 = vrcp.f32 %v1328_v19  ;;  %vm1508_vm9 = vmor %vm1506_vm8, %vm1507_vm6  ;;  %v1526_v50 = vand.u32 2147483648, %v1328_v19  ;;  %v1524_v55 = vand.u32 2147483647, %v1328_v19 }
 0x4be   : > { %v1568_v39 = vmul.f32 %v2450_v62, %v1500_v38  ;;  %v1503_v33 = vsub.f32 1.0, %v1502_v37  ;;  %vm1520_vm12 = vweird.f32 %v1328_v19 }
 0x4bf   : > { %v1527_v7 = vor.u32 1.1754944e-38, %v1526_v50  ;;  %vm1525_vm14 = vcmp.eq.f32.partialorder %v1524_v55, 8.507059e+37 }
 0x4c0   : > { %1585 = vst.msk [vmem:[%s2472_s17 + $0x58] sm:$0xff] %vm1573_vm7, %v1568_v39  ;;  %v1504_v41 = vmul.f32 %v2040_v34, %v1503_v33 }
 0x4c2   : > { %v1505_v3 = vadd.f32 %v2040_v34, %v1504_v41 }
 0x4c3   : > { %v2042_v43 = vpop.eup %2041 }
 0x4c4   : > { %v1509_v45 = vsel %vm1508_vm9, %v2040_v34, %v1505_v3  ;;  %v1516_v47 = vmul.f32 %v2042_v43, %v1328_v19  ;;  %v1330_v48 = vpop.xlane.xlu0 %1329  ;;  %vm1521_vm11 = vweird.f32 %v2042_v43 }
 0x4c5   : > { %v1514_v23 = vsel %vm1511_vm10, %v1513_v44, %v1509_v45  ;;  %2043 = vrcp.f32 %v1330_v48  ;;  %vm1522_vm13 = vmor %vm1520_vm12, %vm1521_vm11  ;;  %v1540_v1 = vand.u32 2147483648, %v1330_v48  ;;  %v1538_v2 = vand.u32 2147483647, %v1330_v48 }
 0x4c6   : > { %v1569_v62 = vmul.f32 %v2454_v46, %v1514_v23  ;;  %v1517_v49 = vsub.f32 1.0, %v1516_v47  ;;  %vm1534_vm0 = vweird.f32 %v1330_v48 }
 0x4c7   : > { %v1541_v6 = vor.u32 1.1754944e-38, %v1540_v1  ;;  %vm1539_vm2 = vcmp.eq.f32.partialorder %v1538_v2, 8.507059e+37 }
 0x4c8   : > { %1586 = vst.msk [vmem:[%s2472_s17 + $0x60] sm:$0xff] %vm1573_vm7, %v1569_v62  ;;  %v1518_v53 = vmul.f32 %v2042_v43, %v1517_v49 }
 0x4ca   : > { %v1519_v52 = vadd.f32 %v2042_v43, %v1518_v53 }
 0x4cb   : > { %v2044_v57 = vpop.eup %2043 }
 0x4cc   : > { %v1523_v54 = vsel %vm1522_vm13, %v2042_v43, %v1519_v52  ;;  %v1530_v60 = vmul.f32 %v2044_v57, %v1330_v48  ;;  %v1332_v61 = vpop.xlane.xlu1 %1331  ;;  %vm1535_vm15 = vweird.f32 %v2044_v57 }
 0x4cd   : > { %v1528_v0 = vsel %vm1525_vm14, %v1527_v7, %v1523_v54  ;;  %2045 = vrcp.f32 %v1332_v61  ;;  %vm1536_vm1 = vmor %vm1534_vm0, %vm1535_vm15  ;;  %v1554_v12 = vand.u32 2147483648, %v1332_v61  ;;  %v1552_v13 = vand.u32 2147483647, %v1332_v61 }
 0x4ce   : > { %v1570_v46 = vmul.f32 %v2458_v51, %v1528_v0  ;;  %v1531_v27 = vsub.f32 1.0, %v1530_v60  ;;  %vm1548_vm4 = vweird.f32 %v1332_v61 }
 0x4cf   : > { %v1555_v16 = vor.u32 1.1754944e-38, %v1554_v12  ;;  %vm1553_vm6 = vcmp.eq.f32.partialorder %v1552_v13, 8.507059e+37 }
 0x4d0   : > { %1587 = vst.msk [vmem:[%s2472_s17 + $0x68] sm:$0xff] %vm1573_vm7, %v1570_v46  ;;  %v1532_v59 = vmul.f32 %v2044_v57, %v1531_v27 }
 0x4d2   : > { %v1533_v4 = vadd.f32 %v2044_v57, %v1532_v59 }
 0x4d3   : > { %v2046_v5 = vpop.eup %2045 }
 0x4d4   : > { %v1537_v8 = vsel %vm1536_vm1, %v2044_v57, %v1533_v4  ;;  %v1544_v11 = vmul.f32 %v2046_v5, %v1332_v61  ;;  %vm1549_vm3 = vweird.f32 %v2046_v5 }
 0x4d5   : > { %v1542_v9 = vsel %vm1539_vm2, %v1541_v6, %v1537_v8  ;;  %vm1550_vm5 = vmor %vm1548_vm4, %vm1549_vm3 }
 0x4d6   : > { %v1571_v51 = vmul.f32 %v2462_v56, %v1542_v9  ;;  %v1545_v10 = vsub.f32 1.0, %v1544_v11 }
 0x4d8   : > { %1588 = vst.msk [vmem:[%s2472_s17 + $0x70] sm:$0xff] %vm1573_vm7, %v1571_v51  ;;  %v1546_v32 = vmul.f32 %v2046_v5, %v1545_v10 }
 0x4da   : > { %v1547_v14 = vadd.f32 %v2046_v5, %v1546_v32 }
 0x4dc   : > { %v1551_v17 = vsel %vm1550_vm5, %v2046_v5, %v1547_v14 }
 0x4dd   : > { %v1556_v18 = vsel %vm1553_vm6, %v1555_v16, %v1551_v17 }
 0x4de   : > { %v1572_v20 = vmul.f32 %v2465_v58, %v1556_v18 }
 0x4e0   : > { %1589 = vst.msk [vmem:[%s2472_s17 + $0x78] sm:$0xff] %vm1573_vm7, %v1572_v20 }
 0x4e1 PF: > { %s16_s21 = sadd.s32 1, %s2053_s21  }
 0x4e2   : > { %p13_p4 = scmp.ge.s32.totalorder %s16_s21, 4  }
 0x4e4   :  { %15 = sbr.rel (!%p13_p4) target bundleno = 1 (0x1), region = 86 }

</bundles_post_ra>
